<compile_context>
chip_gen: v5e
topology: v5e:2x2
jax: 0.10.0
libtpu: 0.0.40
codegen_flags: <defaults>
</compile_context>

<pallas_src>
import functools

import jax
import jax.numpy as jnp
from jax.experimental import pallas as pl
from jax.experimental.pallas import tpu as pltpu

_MAX_UNROLL = 128  # max timesteps (fully unrolled recurrence) per grid step


def _leaky_net_kernel(x_ref, w_ref, spk_ref, mem_rec_ref, mem_state, spk_state,
                      *, tc, beta, threshold, reset_mechanism, matmul_dtype):
    """One grid step = one chunk of `tc` timesteps.

    x_ref:       [tc, B*D_in]          f32   flattened (batch, feature) lanes
    w_ref:       [B*D_in, B*D_out]           block-diagonal weight (W^T blocks)
    spk_ref:     [tc, B*D_out]         spike record chunk (lane-dense)
    mem_rec_ref: [tc, B*D_out]   f32   membrane record chunk (lane-dense)
    mem_state:   [1, B*D_out]    f32   VMEM  membrane carry across chunks
    spk_state:   [1, B*D_out]    f32   VMEM  spike (== reset) carry across chunks
    """
    c = pl.program_id(0)
    # heaviside(init_mem=0 - threshold): trace-time constant.
    init_spk = 1.0 if 0.0 > threshold else 0.0

    # init_leaky(): membrane potential starts at zero before the first timestep.
    @pl.when(c == 0)
    def _():
        mem_state[...] = jnp.zeros_like(mem_state)
        spk_state[...] = jnp.full_like(spk_state, init_spk)

    # One MXU dot for the whole chunk; result is already lane-dense [tc, B*D_out]
    # thanks to the block-diagonal weight (no in-kernel relayout needed).
    a = x_ref[...]
    if matmul_dtype is not None:
        a = a.astype(matmul_dtype)          # in-kernel cast rides a free VPU slot
    cur = jnp.dot(a, w_ref[...], preferred_element_type=jnp.float32)

    # Sequential leaky recurrence: pure VPU work on [1, 128] rows.  `spk` carries
    # spk_{t-1} (== reset_t), so there is no redundant compare on the critical
    # path; cur stays in registers (no VMEM round trip).  tc is a trace-time
    # constant (<= _MAX_UNROLL) so the loop is statically unrolled.
    mem = mem_state[...]
    spk = spk_state[...]
    for tt in range(tc):
        cur_t = cur[tt:tt + 1, :]                          # [1, B*D_out] f32
        if reset_mechanism == "subtract":
            mem = beta * mem + cur_t - threshold * spk
        elif reset_mechanism == "zero":
            mem = (beta * mem + cur_t) * (1.0 - spk)
        else:  # "none"
            mem = beta * mem + cur_t
        spk = (mem > threshold).astype(jnp.float32)
        # Full-lane row stores; off the dependent chain.  (v5e note: these two
        # stores share its single vst slot but still fit under the chain latency.)
        spk_ref[pl.ds(tt, 1), :] = spk.astype(spk_ref.dtype)
        mem_rec_ref[pl.ds(tt, 1), :] = mem

    mem_state[...] = mem
    spk_state[...] = spk


def _choose_time_block(T, requested):
    """Default: single chunk (tc=T) when the whole recurrence can be unrolled."""
    if requested is not None:
        tc = int(requested)
    elif T <= _MAX_UNROLL:
        tc = T
    else:
        tc = T  # fallback: fully unrolled single chunk
        for cand in range(min(_MAX_UNROLL, T), 0, -1):
            if T % cand == 0 and cand % 8 == 0:
                tc = cand
                break
    if T % tc != 0:
        raise ValueError(f"time_block={tc} must divide T={T}")
    if (T // tc) > 1 and tc % 8 != 0:
        raise ValueError(f"time_block={tc} must be a multiple of 8 when T is chunked")
    return tc


def leaky_net_forward(x, weight, *, beta, threshold, reset_mechanism="subtract",
                      time_block=None, matmul_dtype=None, spike_dtype=jnp.float32):
    """x: [T, B, D_in] f32; weight: [D_out, D_in] f32 (PyTorch nn.Linear layout).

    Returns (spk_rec, mem_rec): [T, B, D_out], matching torch.stack over the
    time loop of the PyTorch module.  matmul_dtype=None keeps the matmul in f32
    (strict parity with the f32 nn.Linear); pass jnp.bfloat16 to trade accuracy
    for MXU-native inputs (cast happens in-kernel).
    """
    if reset_mechanism not in ("subtract", "zero", "none"):
        raise ValueError(f"unknown reset_mechanism: {reset_mechanism}")

    T, B, D_in = x.shape
    D_out = weight.shape[0]
    tc = _choose_time_block(T, time_block)
    num_chunks = T // tc
    bd_in, bd_out = B * D_in, B * D_out

    # Weight preprocessing (one-time per weight in real usage): block-diagonal
    # [B*D_in, B*D_out] with B copies of W^T, so the chunk matmul directly emits
    # the lane-dense [tc, B*D_out] layout.  w_big[b*D_in+k, b'*D_out+o] =
    # W[o,k] if b==b' else 0.
    w_t = weight.T                                            # [D_in, D_out]
    if matmul_dtype is not None:
        w_t = w_t.astype(matmul_dtype)
    eye = jnp.eye(B, dtype=w_t.dtype)
    w_big = (eye[:, None, :, None] * w_t[None, :, None, :]).reshape(bd_in, bd_out)

    # No-copy view; no wrapper-side dtype cast of the activations.
    x2 = x.reshape(T, bd_in)

    kernel = functools.partial(
        _leaky_net_kernel,
        tc=tc, beta=float(beta), threshold=float(threshold),
        reset_mechanism=reset_mechanism, matmul_dtype=matmul_dtype)

    spk_flat, mem_flat = pl.pallas_call(
        kernel,
        out_shape=(
            jax.ShapeDtypeStruct((T, bd_out), spike_dtype),
            jax.ShapeDtypeStruct((T, bd_out), jnp.float32),
        ),
        grid_spec=pltpu.PrefetchScalarGridSpec(
            num_scalar_prefetch=0,
            grid=(num_chunks,),
            in_specs=[
                pl.BlockSpec((tc, bd_in), lambda c: (c, 0)),       # x chunk
                pl.BlockSpec((bd_in, bd_out), lambda c: (0, 0)),   # resident weight
            ],
            out_specs=[
                pl.BlockSpec((tc, bd_out), lambda c: (c, 0)),      # spk_rec chunk
                pl.BlockSpec((tc, bd_out), lambda c: (c, 0)),      # mem_rec chunk
            ],
            scratch_shapes=[
                pltpu.VMEM((1, bd_out), jnp.float32),  # membrane carry
                pltpu.VMEM((1, bd_out), jnp.float32),  # spike (reset) carry
            ],
        ),
        compiler_params=pltpu.CompilerParams(
            # The chunk axis is a true recurrence (state carried in scratch).
            dimension_semantics=("arbitrary",),
        ),
    )(x2, w_big)

    # No-copy views back to the module's [T, B, D_out] layout.
    return spk_flat.reshape(T, B, D_out), mem_flat.reshape(T, B, D_out)


def _validate(spk_rec, mem_rec, x, weight, beta, threshold, reset_mechanism):
    """Step-wise semantic check (robust to MXU-vs-XLA matmul rounding near threshold).

    Verifies: (a) spk_t == heaviside(mem_t - threshold) exactly,
              (b) mem_t follows the snn.Leaky recurrence driven by cur = x @ W^T.
    """
    T, B, D_in = x.shape
    D_out = weight.shape[0]
    assert spk_rec.shape == (T, B, D_out) and mem_rec.shape == (T, B, D_out)

    cur = jnp.einsum("tbk,ok->tbo", x, weight,
                     precision=jax.lax.Precision.HIGHEST)
    spk = spk_rec.astype(jnp.float32)
    init_spk = 1.0 if 0.0 > threshold else 0.0
    mem_prev = jnp.concatenate(
        [jnp.zeros((1, B, D_out), jnp.float32), mem_rec[:-1]], axis=0)
    spk_prev = jnp.concatenate(
        [jnp.full((1, B, D_out), init_spk, jnp.float32), spk[:-1]], axis=0)
    if reset_mechanism == "subtract":
        pred = beta * mem_prev + cur - threshold * spk_prev
    elif reset_mechanism == "zero":
        pred = (beta * mem_prev + cur) * (1.0 - spk_prev)
    else:
        pred = beta * mem_prev + cur

    assert jnp.allclose(mem_rec, pred, atol=5e-2, rtol=5e-2), (
        "membrane recurrence mismatch, max abs diff = "
        f"{float(jnp.max(jnp.abs(mem_rec - pred)))}")
    assert jnp.array_equal(spk, (mem_rec > threshold).astype(jnp.float32)), (
        "spike/threshold mismatch")


if __name__ == "__main__":
    # Small shapes consistent with the module: T timesteps of [B, num_input].
    T, B, num_input, num_output = 32, 8, 32, 16
    beta, threshold, reset_mechanism = 0.9, 1.0, "subtract"

    key = jax.random.PRNGKey(0)
    kx, kw = jax.random.split(key)
    x = jax.random.normal(kx, (T, B, num_input), dtype=jnp.float32)
    # torch.nn.init.uniform_(fc1.weight, a=0.0, b=1.0)
    weight = jax.random.uniform(kw, (num_output, num_input), dtype=jnp.float32,
                                minval=0.0, maxval=1.0)

    fwd = jax.jit(leaky_net_forward,
                  static_argnames=("beta", "threshold", "reset_mechanism",
                                   "time_block", "matmul_dtype", "spike_dtype"))

    # Default path: single grid step (tc = T = 32), one MXU dot + unrolled recurrence.
    spk_rec, mem_rec = fwd(x, weight, beta=beta, threshold=threshold,
                           reset_mechanism=reset_mechanism)
    jax.block_until_ready((spk_rec, mem_rec))
    _validate(spk_rec, mem_rec, x, weight, beta, threshold, reset_mechanism)

    # Time-blocked path (4 chunks) to exercise the cross-chunk membrane/spike carry.
    spk_b, mem_b = fwd(x, weight, beta=beta, threshold=threshold,
                       reset_mechanism=reset_mechanism, time_block=8)
    jax.block_until_ready((spk_b, mem_b))
    _validate(spk_b, mem_b, x, weight, beta, threshold, reset_mechanism)

    print("KERNEL_OK")
</pallas_src>

<mosaic_0001>
module attributes {stable_mosaic.version = 11 : i64} {
  func.func @_leaky_net_kernel(%arg0: i32, %arg1: memref<32x256xf32, #tpu.memory_space<vmem>>, %arg2: memref<256x128xf32, #tpu.memory_space<vmem>>, %arg3: memref<32x128xf32, #tpu.memory_space<vmem>>, %arg4: memref<32x128xf32, #tpu.memory_space<vmem>>, %arg5: memref<1x128xf32, #tpu.memory_space<vmem>>, %arg6: memref<1x128xf32, #tpu.memory_space<vmem>>) attributes {dimension_semantics = [#tpu.dimension_semantics<arbitrary>], iteration_bounds = array<i64: 1>, scalar_prefetch = 0 : i64, scratch_operands = 2 : i64, tpu.core_type = #tpu.core_type<tc>, window_params = [{transform_indices = @transform_0, window_bounds = array<i64: 32, 256>}, {pipeline_mode = #tpu.pipeline_mode<synchronous>, transform_indices = @transform_1, window_bounds = array<i64: 256, 128>}, {transform_indices = @transform_2, window_bounds = array<i64: 32, 128>}, {transform_indices = @transform_3, window_bounds = array<i64: 32, 128>}]} {
    %c0_i32 = arith.constant 0 : i32
    %0 = arith.cmpi eq, %arg0, %c0_i32 : i32
    %1 = arith.extui %0 : i1 to i32
    %c0_i32_0 = arith.constant 0 : i32
    %2 = arith.cmpi ne, %1, %c0_i32_0 : i32
    scf.if %2 {
      %cst_205 = arith.constant 0.000000e+00 : f32
      %426 = vector.broadcast %cst_205 : f32 to vector<1x128xf32>
      %c0_206 = arith.constant 0 : index
      %c0_207 = arith.constant 0 : index
      %427 = vector.load %arg5[%c0_206, %c0_207] : memref<1x128xf32, #tpu.memory_space<vmem>>, vector<1x128xf32>
      tpu.vector_store %arg5[%c0_206, %c0_207], %426 {strides = array<i32>} : memref<1x128xf32, #tpu.memory_space<vmem>>, vector<1x128xf32>,
      %cst_208 = arith.constant 0.000000e+00 : f32
      %428 = vector.broadcast %cst_208 : f32 to vector<1x128xf32>
      %c0_209 = arith.constant 0 : index
      %c0_210 = arith.constant 0 : index
      %429 = vector.load %arg6[%c0_209, %c0_210] : memref<1x128xf32, #tpu.memory_space<vmem>>, vector<1x128xf32>
      tpu.vector_store %arg6[%c0_209, %c0_210], %428 {strides = array<i32>} : memref<1x128xf32, #tpu.memory_space<vmem>>, vector<1x128xf32>,
    } else {
    }
    %c0 = arith.constant 0 : index
    %c0_1 = arith.constant 0 : index
    %3 = vector.load %arg1[%c0, %c0_1] : memref<32x256xf32, #tpu.memory_space<vmem>>, vector<32x256xf32>
    %c0_2 = arith.constant 0 : index
    %c0_3 = arith.constant 0 : index
    %4 = vector.load %arg2[%c0_2, %c0_3] : memref<256x128xf32, #tpu.memory_space<vmem>>, vector<256x128xf32>
    %cst = arith.constant dense<0.000000e+00> : vector<32x128xf32>
    %5 = tpu.matmul %3, %4, %cst {dimension_numbers = #tpu.dot_dimension_numbers<[1], [0], [0], [1], [0, 0, 1, 1], [], []>} : vector<32x256xf32>, vector<256x128xf32>, vector<32x128xf32> -> vector<32x128xf32>
    %c0_4 = arith.constant 0 : index
    %c0_5 = arith.constant 0 : index
    %6 = vector.load %arg5[%c0_4, %c0_5] : memref<1x128xf32, #tpu.memory_space<vmem>>, vector<1x128xf32>
    %c0_6 = arith.constant 0 : index
    %c0_7 = arith.constant 0 : index
    %7 = vector.load %arg6[%c0_6, %c0_7] : memref<1x128xf32, #tpu.memory_space<vmem>>, vector<1x128xf32>
    %8 = vector.extract_strided_slice %5 {offsets = [0, 0], sizes = [1, 128], strides = [1, 1]} : vector<32x128xf32> to vector<1x128xf32>
    %cst_8 = arith.constant 0.899999976 : f32
    %9 = vector.broadcast %cst_8 : f32 to vector<1x128xf32>
    %10 = arith.mulf %9, %6 : vector<1x128xf32>
    %11 = arith.addf %10, %8 : vector<1x128xf32>
    %cst_9 = arith.constant 1.000000e+00 : f32
    %12 = vector.broadcast %cst_9 : f32 to vector<1x128xf32>
    %13 = arith.mulf %12, %7 : vector<1x128xf32>
    %14 = arith.subf %11, %13 : vector<1x128xf32>
    %cst_10 = arith.constant 1.000000e+00 : f32
    %15 = vector.broadcast %cst_10 : f32 to vector<1x128xf32>
    %16 = arith.cmpf ogt, %14, %15 : vector<1x128xf32>
    %17 = arith.extui %16 : vector<1x128xi1> to vector<1x128xi32>
    %18 = arith.sitofp %17 : vector<1x128xi32> to vector<1x128xf32>
    %c0_11 = arith.constant 0 : index
    %c0_12 = arith.constant 0 : index
    %19 = vector.load %arg3[%c0_11, %c0_12] : memref<32x128xf32, #tpu.memory_space<vmem>>, vector<1x128xf32>
    tpu.vector_store %arg3[%c0_11, %c0_12], %18 {strides = array<i32>} : memref<32x128xf32, #tpu.memory_space<vmem>>, vector<1x128xf32>,
    %c0_13 = arith.constant 0 : index
    %c0_14 = arith.constant 0 : index
    %20 = vector.load %arg4[%c0_13, %c0_14] : memref<32x128xf32, #tpu.memory_space<vmem>>, vector<1x128xf32>
    tpu.vector_store %arg4[%c0_13, %c0_14], %14 {strides = array<i32>} : memref<32x128xf32, #tpu.memory_space<vmem>>, vector<1x128xf32>,
    %21 = vector.extract_strided_slice %5 {offsets = [1, 0], sizes = [1, 128], strides = [1, 1]} : vector<32x128xf32> to vector<1x128xf32>
    %cst_15 = arith.constant 0.899999976 : f32
    %22 = vector.broadcast %cst_15 : f32 to vector<1x128xf32>
    %23 = arith.mulf %22, %14 : vector<1x128xf32>
    %24 = arith.addf %23, %21 : vector<1x128xf32>
    %cst_16 = arith.constant 1.000000e+00 : f32
    %25 = vector.broadcast %cst_16 : f32 to vector<1x128xf32>
    %26 = arith.mulf %25, %18 : vector<1x128xf32>
    %27 = arith.subf %24, %26 : vector<1x128xf32>
    %cst_17 = arith.constant 1.000000e+00 : f32
    %28 = vector.broadcast %cst_17 : f32 to vector<1x128xf32>
    %29 = arith.cmpf ogt, %27, %28 : vector<1x128xf32>
    %30 = arith.extui %29 : vector<1x128xi1> to vector<1x128xi32>
    %31 = arith.sitofp %30 : vector<1x128xi32> to vector<1x128xf32>
    %c1 = arith.constant 1 : index
    %c0_18 = arith.constant 0 : index
    %32 = vector.load %arg3[%c1, %c0_18] : memref<32x128xf32, #tpu.memory_space<vmem>>, vector<1x128xf32>
    tpu.vector_store %arg3[%c1, %c0_18], %31 {strides = array<i32>} : memref<32x128xf32, #tpu.memory_space<vmem>>, vector<1x128xf32>,
    %c1_19 = arith.constant 1 : index
    %c0_20 = arith.constant 0 : index
    %33 = vector.load %arg4[%c1_19, %c0_20] : memref<32x128xf32, #tpu.memory_space<vmem>>, vector<1x128xf32>
    tpu.vector_store %arg4[%c1_19, %c0_20], %27 {strides = array<i32>} : memref<32x128xf32, #tpu.memory_space<vmem>>, vector<1x128xf32>,
    %34 = vector.extract_strided_slice %5 {offsets = [2, 0], sizes = [1, 128], strides = [1, 1]} : vector<32x128xf32> to vector<1x128xf32>
    %cst_21 = arith.constant 0.899999976 : f32
    %35 = vector.broadcast %cst_21 : f32 to vector<1x128xf32>
    %36 = arith.mulf %35, %27 : vector<1x128xf32>
    %37 = arith.addf %36, %34 : vector<1x128xf32>
    %cst_22 = arith.constant 1.000000e+00 : f32
    %38 = vector.broadcast %cst_22 : f32 to vector<1x128xf32>
    %39 = arith.mulf %38, %31 : vector<1x128xf32>
    %40 = arith.subf %37, %39 : vector<1x128xf32>
    %cst_23 = arith.constant 1.000000e+00 : f32
    %41 = vector.broadcast %cst_23 : f32 to vector<1x128xf32>
    %42 = arith.cmpf ogt, %40, %41 : vector<1x128xf32>
    %43 = arith.extui %42 : vector<1x128xi1> to vector<1x128xi32>
    %44 = arith.sitofp %43 : vector<1x128xi32> to vector<1x128xf32>
    %c2 = arith.constant 2 : index
    %c0_24 = arith.constant 0 : index
    %45 = vector.load %arg3[%c2, %c0_24] : memref<32x128xf32, #tpu.memory_space<vmem>>, vector<1x128xf32>
    tpu.vector_store %arg3[%c2, %c0_24], %44 {strides = array<i32>} : memref<32x128xf32, #tpu.memory_space<vmem>>, vector<1x128xf32>,
    %c2_25 = arith.constant 2 : index
    %c0_26 = arith.constant 0 : index
    %46 = vector.load %arg4[%c2_25, %c0_26] : memref<32x128xf32, #tpu.memory_space<vmem>>, vector<1x128xf32>
    tpu.vector_store %arg4[%c2_25, %c0_26], %40 {strides = array<i32>} : memref<32x128xf32, #tpu.memory_space<vmem>>, vector<1x128xf32>,
    %47 = vector.extract_strided_slice %5 {offsets = [3, 0], sizes = [1, 128], strides = [1, 1]} : vector<32x128xf32> to vector<1x128xf32>
    %cst_27 = arith.constant 0.899999976 : f32
    %48 = vector.broadcast %cst_27 : f32 to vector<1x128xf32>
    %49 = arith.mulf %48, %40 : vector<1x128xf32>
    %50 = arith.addf %49, %47 : vector<1x128xf32>
    %cst_28 = arith.constant 1.000000e+00 : f32
    %51 = vector.broadcast %cst_28 : f32 to vector<1x128xf32>
    %52 = arith.mulf %51, %44 : vector<1x128xf32>
    %53 = arith.subf %50, %52 : vector<1x128xf32>
    %cst_29 = arith.constant 1.000000e+00 : f32
    %54 = vector.broadcast %cst_29 : f32 to vector<1x128xf32>
    %55 = arith.cmpf ogt, %53, %54 : vector<1x128xf32>
    %56 = arith.extui %55 : vector<1x128xi1> to vector<1x128xi32>
    %57 = arith.sitofp %56 : vector<1x128xi32> to vector<1x128xf32>
    %c3 = arith.constant 3 : index
    %c0_30 = arith.constant 0 : index
    %58 = vector.load %arg3[%c3, %c0_30] : memref<32x128xf32, #tpu.memory_space<vmem>>, vector<1x128xf32>
    tpu.vector_store %arg3[%c3, %c0_30], %57 {strides = array<i32>} : memref<32x128xf32, #tpu.memory_space<vmem>>, vector<1x128xf32>,
    %c3_31 = arith.constant 3 : index
    %c0_32 = arith.constant 0 : index
    %59 = vector.load %arg4[%c3_31, %c0_32] : memref<32x128xf32, #tpu.memory_space<vmem>>, vector<1x128xf32>
    tpu.vector_store %arg4[%c3_31, %c0_32], %53 {strides = array<i32>} : memref<32x128xf32, #tpu.memory_space<vmem>>, vector<1x128xf32>,
    %60 = vector.extract_strided_slice %5 {offsets = [4, 0], sizes = [1, 128], strides = [1, 1]} : vector<32x128xf32> to vector<1x128xf32>
    %cst_33 = arith.constant 0.899999976 : f32
    %61 = vector.broadcast %cst_33 : f32 to vector<1x128xf32>
    %62 = arith.mulf %61, %53 : vector<1x128xf32>
    %63 = arith.addf %62, %60 : vector<1x128xf32>
    %cst_34 = arith.constant 1.000000e+00 : f32
    %64 = vector.broadcast %cst_34 : f32 to vector<1x128xf32>
    %65 = arith.mulf %64, %57 : vector<1x128xf32>
    %66 = arith.subf %63, %65 : vector<1x128xf32>
    %cst_35 = arith.constant 1.000000e+00 : f32
    %67 = vector.broadcast %cst_35 : f32 to vector<1x128xf32>
    %68 = arith.cmpf ogt, %66, %67 : vector<1x128xf32>
    %69 = arith.extui %68 : vector<1x128xi1> to vector<1x128xi32>
    %70 = arith.sitofp %69 : vector<1x128xi32> to vector<1x128xf32>
    %c4 = arith.constant 4 : index
    %c0_36 = arith.constant 0 : index
    %71 = vector.load %arg3[%c4, %c0_36] : memref<32x128xf32, #tpu.memory_space<vmem>>, vector<1x128xf32>
    tpu.vector_store %arg3[%c4, %c0_36], %70 {strides = array<i32>} : memref<32x128xf32, #tpu.memory_space<vmem>>, vector<1x128xf32>,
    %c4_37 = arith.constant 4 : index
    %c0_38 = arith.constant 0 : index
    %72 = vector.load %arg4[%c4_37, %c0_38] : memref<32x128xf32, #tpu.memory_space<vmem>>, vector<1x128xf32>
    tpu.vector_store %arg4[%c4_37, %c0_38], %66 {strides = array<i32>} : memref<32x128xf32, #tpu.memory_space<vmem>>, vector<1x128xf32>,
    %73 = vector.extract_strided_slice %5 {offsets = [5, 0], sizes = [1, 128], strides = [1, 1]} : vector<32x128xf32> to vector<1x128xf32>
    %cst_39 = arith.constant 0.899999976 : f32
    %74 = vector.broadcast %cst_39 : f32 to vector<1x128xf32>
    %75 = arith.mulf %74, %66 : vector<1x128xf32>
    %76 = arith.addf %75, %73 : vector<1x128xf32>
    %cst_40 = arith.constant 1.000000e+00 : f32
    %77 = vector.broadcast %cst_40 : f32 to vector<1x128xf32>
    %78 = arith.mulf %77, %70 : vector<1x128xf32>
    %79 = arith.subf %76, %78 : vector<1x128xf32>
    %cst_41 = arith.constant 1.000000e+00 : f32
    %80 = vector.broadcast %cst_41 : f32 to vector<1x128xf32>
    %81 = arith.cmpf ogt, %79, %80 : vector<1x128xf32>
    %82 = arith.extui %81 : vector<1x128xi1> to vector<1x128xi32>
    %83 = arith.sitofp %82 : vector<1x128xi32> to vector<1x128xf32>
    %c5 = arith.constant 5 : index
    %c0_42 = arith.constant 0 : index
    %84 = vector.load %arg3[%c5, %c0_42] : memref<32x128xf32, #tpu.memory_space<vmem>>, vector<1x128xf32>
    tpu.vector_store %arg3[%c5, %c0_42], %83 {strides = array<i32>} : memref<32x128xf32, #tpu.memory_space<vmem>>, vector<1x128xf32>,
    %c5_43 = arith.constant 5 : index
    %c0_44 = arith.constant 0 : index
    %85 = vector.load %arg4[%c5_43, %c0_44] : memref<32x128xf32, #tpu.memory_space<vmem>>, vector<1x128xf32>
    tpu.vector_store %arg4[%c5_43, %c0_44], %79 {strides = array<i32>} : memref<32x128xf32, #tpu.memory_space<vmem>>, vector<1x128xf32>,
    %86 = vector.extract_strided_slice %5 {offsets = [6, 0], sizes = [1, 128], strides = [1, 1]} : vector<32x128xf32> to vector<1x128xf32>
    %cst_45 = arith.constant 0.899999976 : f32
    %87 = vector.broadcast %cst_45 : f32 to vector<1x128xf32>
    %88 = arith.mulf %87, %79 : vector<1x128xf32>
    %89 = arith.addf %88, %86 : vector<1x128xf32>
    %cst_46 = arith.constant 1.000000e+00 : f32
    %90 = vector.broadcast %cst_46 : f32 to vector<1x128xf32>
    %91 = arith.mulf %90, %83 : vector<1x128xf32>
    %92 = arith.subf %89, %91 : vector<1x128xf32>
    %cst_47 = arith.constant 1.000000e+00 : f32
    %93 = vector.broadcast %cst_47 : f32 to vector<1x128xf32>
    %94 = arith.cmpf ogt, %92, %93 : vector<1x128xf32>
    %95 = arith.extui %94 : vector<1x128xi1> to vector<1x128xi32>
    %96 = arith.sitofp %95 : vector<1x128xi32> to vector<1x128xf32>
    %c6 = arith.constant 6 : index
    %c0_48 = arith.constant 0 : index
    %97 = vector.load %arg3[%c6, %c0_48] : memref<32x128xf32, #tpu.memory_space<vmem>>, vector<1x128xf32>
    tpu.vector_store %arg3[%c6, %c0_48], %96 {strides = array<i32>} : memref<32x128xf32, #tpu.memory_space<vmem>>, vector<1x128xf32>,
    %c6_49 = arith.constant 6 : index
    %c0_50 = arith.constant 0 : index
    %98 = vector.load %arg4[%c6_49, %c0_50] : memref<32x128xf32, #tpu.memory_space<vmem>>, vector<1x128xf32>
    tpu.vector_store %arg4[%c6_49, %c0_50], %92 {strides = array<i32>} : memref<32x128xf32, #tpu.memory_space<vmem>>, vector<1x128xf32>,
    %99 = vector.extract_strided_slice %5 {offsets = [7, 0], sizes = [1, 128], strides = [1, 1]} : vector<32x128xf32> to vector<1x128xf32>
    %cst_51 = arith.constant 0.899999976 : f32
    %100 = vector.broadcast %cst_51 : f32 to vector<1x128xf32>
    %101 = arith.mulf %100, %92 : vector<1x128xf32>
    %102 = arith.addf %101, %99 : vector<1x128xf32>
    %cst_52 = arith.constant 1.000000e+00 : f32
    %103 = vector.broadcast %cst_52 : f32 to vector<1x128xf32>
    %104 = arith.mulf %103, %96 : vector<1x128xf32>
    %105 = arith.subf %102, %104 : vector<1x128xf32>
    %cst_53 = arith.constant 1.000000e+00 : f32
    %106 = vector.broadcast %cst_53 : f32 to vector<1x128xf32>
    %107 = arith.cmpf ogt, %105, %106 : vector<1x128xf32>
    %108 = arith.extui %107 : vector<1x128xi1> to vector<1x128xi32>
    %109 = arith.sitofp %108 : vector<1x128xi32> to vector<1x128xf32>
    %c7 = arith.constant 7 : index
    %c0_54 = arith.constant 0 : index
    %110 = vector.load %arg3[%c7, %c0_54] : memref<32x128xf32, #tpu.memory_space<vmem>>, vector<1x128xf32>
    tpu.vector_store %arg3[%c7, %c0_54], %109 {strides = array<i32>} : memref<32x128xf32, #tpu.memory_space<vmem>>, vector<1x128xf32>,
    %c7_55 = arith.constant 7 : index
    %c0_56 = arith.constant 0 : index
    %111 = vector.load %arg4[%c7_55, %c0_56] : memref<32x128xf32, #tpu.memory_space<vmem>>, vector<1x128xf32>
    tpu.vector_store %arg4[%c7_55, %c0_56], %105 {strides = array<i32>} : memref<32x128xf32, #tpu.memory_space<vmem>>, vector<1x128xf32>,
    %112 = vector.extract_strided_slice %5 {offsets = [8, 0], sizes = [1, 128], strides = [1, 1]} : vector<32x128xf32> to vector<1x128xf32>
    %cst_57 = arith.constant 0.899999976 : f32
    %113 = vector.broadcast %cst_57 : f32 to vector<1x128xf32>
    %114 = arith.mulf %113, %105 : vector<1x128xf32>
    %115 = arith.addf %114, %112 : vector<1x128xf32>
    %cst_58 = arith.constant 1.000000e+00 : f32
    %116 = vector.broadcast %cst_58 : f32 to vector<1x128xf32>
    %117 = arith.mulf %116, %109 : vector<1x128xf32>
    %118 = arith.subf %115, %117 : vector<1x128xf32>
    %cst_59 = arith.constant 1.000000e+00 : f32
    %119 = vector.broadcast %cst_59 : f32 to vector<1x128xf32>
    %120 = arith.cmpf ogt, %118, %119 : vector<1x128xf32>
    %121 = arith.extui %120 : vector<1x128xi1> to vector<1x128xi32>
    %122 = arith.sitofp %121 : vector<1x128xi32> to vector<1x128xf32>
    %c8 = arith.constant 8 : index
    %c0_60 = arith.constant 0 : index
    %123 = vector.load %arg3[%c8, %c0_60] : memref<32x128xf32, #tpu.memory_space<vmem>>, vector<1x128xf32>
    tpu.vector_store %arg3[%c8, %c0_60], %122 {strides = array<i32>} : memref<32x128xf32, #tpu.memory_space<vmem>>, vector<1x128xf32>,
    %c8_61 = arith.constant 8 : index
    %c0_62 = arith.constant 0 : index
    %124 = vector.load %arg4[%c8_61, %c0_62] : memref<32x128xf32, #tpu.memory_space<vmem>>, vector<1x128xf32>
    tpu.vector_store %arg4[%c8_61, %c0_62], %118 {strides = array<i32>} : memref<32x128xf32, #tpu.memory_space<vmem>>, vector<1x128xf32>,
    %125 = vector.extract_strided_slice %5 {offsets = [9, 0], sizes = [1, 128], strides = [1, 1]} : vector<32x128xf32> to vector<1x128xf32>
    %cst_63 = arith.constant 0.899999976 : f32
    %126 = vector.broadcast %cst_63 : f32 to vector<1x128xf32>
    %127 = arith.mulf %126, %118 : vector<1x128xf32>
    %128 = arith.addf %127, %125 : vector<1x128xf32>
    %cst_64 = arith.constant 1.000000e+00 : f32
    %129 = vector.broadcast %cst_64 : f32 to vector<1x128xf32>
    %130 = arith.mulf %129, %122 : vector<1x128xf32>
    %131 = arith.subf %128, %130 : vector<1x128xf32>
    %cst_65 = arith.constant 1.000000e+00 : f32
    %132 = vector.broadcast %cst_65 : f32 to vector<1x128xf32>
    %133 = arith.cmpf ogt, %131, %132 : vector<1x128xf32>
    %134 = arith.extui %133 : vector<1x128xi1> to vector<1x128xi32>
    %135 = arith.sitofp %134 : vector<1x128xi32> to vector<1x128xf32>
    %c9 = arith.constant 9 : index
    %c0_66 = arith.constant 0 : index
    %136 = vector.load %arg3[%c9, %c0_66] : memref<32x128xf32, #tpu.memory_space<vmem>>, vector<1x128xf32>
    tpu.vector_store %arg3[%c9, %c0_66], %135 {strides = array<i32>} : memref<32x128xf32, #tpu.memory_space<vmem>>, vector<1x128xf32>,
    %c9_67 = arith.constant 9 : index
    %c0_68 = arith.constant 0 : index
    %137 = vector.load %arg4[%c9_67, %c0_68] : memref<32x128xf32, #tpu.memory_space<vmem>>, vector<1x128xf32>
    tpu.vector_store %arg4[%c9_67, %c0_68], %131 {strides = array<i32>} : memref<32x128xf32, #tpu.memory_space<vmem>>, vector<1x128xf32>,
    %138 = vector.extract_strided_slice %5 {offsets = [10, 0], sizes = [1, 128], strides = [1, 1]} : vector<32x128xf32> to vector<1x128xf32>
    %cst_69 = arith.constant 0.899999976 : f32
    %139 = vector.broadcast %cst_69 : f32 to vector<1x128xf32>
    %140 = arith.mulf %139, %131 : vector<1x128xf32>
    %141 = arith.addf %140, %138 : vector<1x128xf32>
    %cst_70 = arith.constant 1.000000e+00 : f32
    %142 = vector.broadcast %cst_70 : f32 to vector<1x128xf32>
    %143 = arith.mulf %142, %135 : vector<1x128xf32>
    %144 = arith.subf %141, %143 : vector<1x128xf32>
    %cst_71 = arith.constant 1.000000e+00 : f32
    %145 = vector.broadcast %cst_71 : f32 to vector<1x128xf32>
    %146 = arith.cmpf ogt, %144, %145 : vector<1x128xf32>
    %147 = arith.extui %146 : vector<1x128xi1> to vector<1x128xi32>
    %148 = arith.sitofp %147 : vector<1x128xi32> to vector<1x128xf32>
    %c10 = arith.constant 10 : index
    %c0_72 = arith.constant 0 : index
    %149 = vector.load %arg3[%c10, %c0_72] : memref<32x128xf32, #tpu.memory_space<vmem>>, vector<1x128xf32>
    tpu.vector_store %arg3[%c10, %c0_72], %148 {strides = array<i32>} : memref<32x128xf32, #tpu.memory_space<vmem>>, vector<1x128xf32>,
    %c10_73 = arith.constant 10 : index
    %c0_74 = arith.constant 0 : index
    %150 = vector.load %arg4[%c10_73, %c0_74] : memref<32x128xf32, #tpu.memory_space<vmem>>, vector<1x128xf32>
    tpu.vector_store %arg4[%c10_73, %c0_74], %144 {strides = array<i32>} : memref<32x128xf32, #tpu.memory_space<vmem>>, vector<1x128xf32>,
    %151 = vector.extract_strided_slice %5 {offsets = [11, 0], sizes = [1, 128], strides = [1, 1]} : vector<32x128xf32> to vector<1x128xf32>
    %cst_75 = arith.constant 0.899999976 : f32
    %152 = vector.broadcast %cst_75 : f32 to vector<1x128xf32>
    %153 = arith.mulf %152, %144 : vector<1x128xf32>
    %154 = arith.addf %153, %151 : vector<1x128xf32>
    %cst_76 = arith.constant 1.000000e+00 : f32
    %155 = vector.broadcast %cst_76 : f32 to vector<1x128xf32>
    %156 = arith.mulf %155, %148 : vector<1x128xf32>
    %157 = arith.subf %154, %156 : vector<1x128xf32>
    %cst_77 = arith.constant 1.000000e+00 : f32
    %158 = vector.broadcast %cst_77 : f32 to vector<1x128xf32>
    %159 = arith.cmpf ogt, %157, %158 : vector<1x128xf32>
    %160 = arith.extui %159 : vector<1x128xi1> to vector<1x128xi32>
    %161 = arith.sitofp %160 : vector<1x128xi32> to vector<1x128xf32>
    %c11 = arith.constant 11 : index
    %c0_78 = arith.constant 0 : index
    %162 = vector.load %arg3[%c11, %c0_78] : memref<32x128xf32, #tpu.memory_space<vmem>>, vector<1x128xf32>
    tpu.vector_store %arg3[%c11, %c0_78], %161 {strides = array<i32>} : memref<32x128xf32, #tpu.memory_space<vmem>>, vector<1x128xf32>,
    %c11_79 = arith.constant 11 : index
    %c0_80 = arith.constant 0 : index
    %163 = vector.load %arg4[%c11_79, %c0_80] : memref<32x128xf32, #tpu.memory_space<vmem>>, vector<1x128xf32>
    tpu.vector_store %arg4[%c11_79, %c0_80], %157 {strides = array<i32>} : memref<32x128xf32, #tpu.memory_space<vmem>>, vector<1x128xf32>,
    %164 = vector.extract_strided_slice %5 {offsets = [12, 0], sizes = [1, 128], strides = [1, 1]} : vector<32x128xf32> to vector<1x128xf32>
    %cst_81 = arith.constant 0.899999976 : f32
    %165 = vector.broadcast %cst_81 : f32 to vector<1x128xf32>
    %166 = arith.mulf %165, %157 : vector<1x128xf32>
    %167 = arith.addf %166, %164 : vector<1x128xf32>
    %cst_82 = arith.constant 1.000000e+00 : f32
    %168 = vector.broadcast %cst_82 : f32 to vector<1x128xf32>
    %169 = arith.mulf %168, %161 : vector<1x128xf32>
    %170 = arith.subf %167, %169 : vector<1x128xf32>
    %cst_83 = arith.constant 1.000000e+00 : f32
    %171 = vector.broadcast %cst_83 : f32 to vector<1x128xf32>
    %172 = arith.cmpf ogt, %170, %171 : vector<1x128xf32>
    %173 = arith.extui %172 : vector<1x128xi1> to vector<1x128xi32>
    %174 = arith.sitofp %173 : vector<1x128xi32> to vector<1x128xf32>
    %c12 = arith.constant 12 : index
    %c0_84 = arith.constant 0 : index
    %175 = vector.load %arg3[%c12, %c0_84] : memref<32x128xf32, #tpu.memory_space<vmem>>, vector<1x128xf32>
    tpu.vector_store %arg3[%c12, %c0_84], %174 {strides = array<i32>} : memref<32x128xf32, #tpu.memory_space<vmem>>, vector<1x128xf32>,
    %c12_85 = arith.constant 12 : index
    %c0_86 = arith.constant 0 : index
    %176 = vector.load %arg4[%c12_85, %c0_86] : memref<32x128xf32, #tpu.memory_space<vmem>>, vector<1x128xf32>
    tpu.vector_store %arg4[%c12_85, %c0_86], %170 {strides = array<i32>} : memref<32x128xf32, #tpu.memory_space<vmem>>, vector<1x128xf32>,
    %177 = vector.extract_strided_slice %5 {offsets = [13, 0], sizes = [1, 128], strides = [1, 1]} : vector<32x128xf32> to vector<1x128xf32>
    %cst_87 = arith.constant 0.899999976 : f32
    %178 = vector.broadcast %cst_87 : f32 to vector<1x128xf32>
    %179 = arith.mulf %178, %170 : vector<1x128xf32>
    %180 = arith.addf %179, %177 : vector<1x128xf32>
    %cst_88 = arith.constant 1.000000e+00 : f32
    %181 = vector.broadcast %cst_88 : f32 to vector<1x128xf32>
    %182 = arith.mulf %181, %174 : vector<1x128xf32>
    %183 = arith.subf %180, %182 : vector<1x128xf32>
    %cst_89 = arith.constant 1.000000e+00 : f32
    %184 = vector.broadcast %cst_89 : f32 to vector<1x128xf32>
    %185 = arith.cmpf ogt, %183, %184 : vector<1x128xf32>
    %186 = arith.extui %185 : vector<1x128xi1> to vector<1x128xi32>
    %187 = arith.sitofp %186 : vector<1x128xi32> to vector<1x128xf32>
    %c13 = arith.constant 13 : index
    %c0_90 = arith.constant 0 : index
    %188 = vector.load %arg3[%c13, %c0_90] : memref<32x128xf32, #tpu.memory_space<vmem>>, vector<1x128xf32>
    tpu.vector_store %arg3[%c13, %c0_90], %187 {strides = array<i32>} : memref<32x128xf32, #tpu.memory_space<vmem>>, vector<1x128xf32>,
    %c13_91 = arith.constant 13 : index
    %c0_92 = arith.constant 0 : index
    %189 = vector.load %arg4[%c13_91, %c0_92] : memref<32x128xf32, #tpu.memory_space<vmem>>, vector<1x128xf32>
    tpu.vector_store %arg4[%c13_91, %c0_92], %183 {strides = array<i32>} : memref<32x128xf32, #tpu.memory_space<vmem>>, vector<1x128xf32>,
    %190 = vector.extract_strided_slice %5 {offsets = [14, 0], sizes = [1, 128], strides = [1, 1]} : vector<32x128xf32> to vector<1x128xf32>
    %cst_93 = arith.constant 0.899999976 : f32
    %191 = vector.broadcast %cst_93 : f32 to vector<1x128xf32>
    %192 = arith.mulf %191, %183 : vector<1x128xf32>
    %193 = arith.addf %192, %190 : vector<1x128xf32>
    %cst_94 = arith.constant 1.000000e+00 : f32
    %194 = vector.broadcast %cst_94 : f32 to vector<1x128xf32>
    %195 = arith.mulf %194, %187 : vector<1x128xf32>
    %196 = arith.subf %193, %195 : vector<1x128xf32>
    %cst_95 = arith.constant 1.000000e+00 : f32
    %197 = vector.broadcast %cst_95 : f32 to vector<1x128xf32>
    %198 = arith.cmpf ogt, %196, %197 : vector<1x128xf32>
    %199 = arith.extui %198 : vector<1x128xi1> to vector<1x128xi32>
    %200 = arith.sitofp %199 : vector<1x128xi32> to vector<1x128xf32>
    %c14 = arith.constant 14 : index
    %c0_96 = arith.constant 0 : index
    %201 = vector.load %arg3[%c14, %c0_96] : memref<32x128xf32, #tpu.memory_space<vmem>>, vector<1x128xf32>
    tpu.vector_store %arg3[%c14, %c0_96], %200 {strides = array<i32>} : memref<32x128xf32, #tpu.memory_space<vmem>>, vector<1x128xf32>,
    %c14_97 = arith.constant 14 : index
    %c0_98 = arith.constant 0 : index
    %202 = vector.load %arg4[%c14_97, %c0_98] : memref<32x128xf32, #tpu.memory_space<vmem>>, vector<1x128xf32>
    tpu.vector_store %arg4[%c14_97, %c0_98], %196 {strides = array<i32>} : memref<32x128xf32, #tpu.memory_space<vmem>>, vector<1x128xf32>,
    %203 = vector.extract_strided_slice %5 {offsets = [15, 0], sizes = [1, 128], strides = [1, 1]} : vector<32x128xf32> to vector<1x128xf32>
    %cst_99 = arith.constant 0.899999976 : f32
    %204 = vector.broadcast %cst_99 : f32 to vector<1x128xf32>
    %205 = arith.mulf %204, %196 : vector<1x128xf32>
    %206 = arith.addf %205, %203 : vector<1x128xf32>
    %cst_100 = arith.constant 1.000000e+00 : f32
    %207 = vector.broadcast %cst_100 : f32 to vector<1x128xf32>
    %208 = arith.mulf %207, %200 : vector<1x128xf32>
    %209 = arith.subf %206, %208 : vector<1x128xf32>
    %cst_101 = arith.constant 1.000000e+00 : f32
    %210 = vector.broadcast %cst_101 : f32 to vector<1x128xf32>
    %211 = arith.cmpf ogt, %209, %210 : vector<1x128xf32>
    %212 = arith.extui %211 : vector<1x128xi1> to vector<1x128xi32>
    %213 = arith.sitofp %212 : vector<1x128xi32> to vector<1x128xf32>
    %c15 = arith.constant 15 : index
    %c0_102 = arith.constant 0 : index
    %214 = vector.load %arg3[%c15, %c0_102] : memref<32x128xf32, #tpu.memory_space<vmem>>, vector<1x128xf32>
    tpu.vector_store %arg3[%c15, %c0_102], %213 {strides = array<i32>} : memref<32x128xf32, #tpu.memory_space<vmem>>, vector<1x128xf32>,
    %c15_103 = arith.constant 15 : index
    %c0_104 = arith.constant 0 : index
    %215 = vector.load %arg4[%c15_103, %c0_104] : memref<32x128xf32, #tpu.memory_space<vmem>>, vector<1x128xf32>
    tpu.vector_store %arg4[%c15_103, %c0_104], %209 {strides = array<i32>} : memref<32x128xf32, #tpu.memory_space<vmem>>, vector<1x128xf32>,
    %216 = vector.extract_strided_slice %5 {offsets = [16, 0], sizes = [1, 128], strides = [1, 1]} : vector<32x128xf32> to vector<1x128xf32>
    %cst_105 = arith.constant 0.899999976 : f32
    %217 = vector.broadcast %cst_105 : f32 to vector<1x128xf32>
    %218 = arith.mulf %217, %209 : vector<1x128xf32>
    %219 = arith.addf %218, %216 : vector<1x128xf32>
    %cst_106 = arith.constant 1.000000e+00 : f32
    %220 = vector.broadcast %cst_106 : f32 to vector<1x128xf32>
    %221 = arith.mulf %220, %213 : vector<1x128xf32>
    %222 = arith.subf %219, %221 : vector<1x128xf32>
    %cst_107 = arith.constant 1.000000e+00 : f32
    %223 = vector.broadcast %cst_107 : f32 to vector<1x128xf32>
    %224 = arith.cmpf ogt, %222, %223 : vector<1x128xf32>
    %225 = arith.extui %224 : vector<1x128xi1> to vector<1x128xi32>
    %226 = arith.sitofp %225 : vector<1x128xi32> to vector<1x128xf32>
    %c16 = arith.constant 16 : index
    %c0_108 = arith.constant 0 : index
    %227 = vector.load %arg3[%c16, %c0_108] : memref<32x128xf32, #tpu.memory_space<vmem>>, vector<1x128xf32>
    tpu.vector_store %arg3[%c16, %c0_108], %226 {strides = array<i32>} : memref<32x128xf32, #tpu.memory_space<vmem>>, vector<1x128xf32>,
    %c16_109 = arith.constant 16 : index
    %c0_110 = arith.constant 0 : index
    %228 = vector.load %arg4[%c16_109, %c0_110] : memref<32x128xf32, #tpu.memory_space<vmem>>, vector<1x128xf32>
    tpu.vector_store %arg4[%c16_109, %c0_110], %222 {strides = array<i32>} : memref<32x128xf32, #tpu.memory_space<vmem>>, vector<1x128xf32>,
    %229 = vector.extract_strided_slice %5 {offsets = [17, 0], sizes = [1, 128], strides = [1, 1]} : vector<32x128xf32> to vector<1x128xf32>
    %cst_111 = arith.constant 0.899999976 : f32
    %230 = vector.broadcast %cst_111 : f32 to vector<1x128xf32>
    %231 = arith.mulf %230, %222 : vector<1x128xf32>
    %232 = arith.addf %231, %229 : vector<1x128xf32>
    %cst_112 = arith.constant 1.000000e+00 : f32
    %233 = vector.broadcast %cst_112 : f32 to vector<1x128xf32>
    %234 = arith.mulf %233, %226 : vector<1x128xf32>
    %235 = arith.subf %232, %234 : vector<1x128xf32>
    %cst_113 = arith.constant 1.000000e+00 : f32
    %236 = vector.broadcast %cst_113 : f32 to vector<1x128xf32>
    %237 = arith.cmpf ogt, %235, %236 : vector<1x128xf32>
    %238 = arith.extui %237 : vector<1x128xi1> to vector<1x128xi32>
    %239 = arith.sitofp %238 : vector<1x128xi32> to vector<1x128xf32>
    %c17 = arith.constant 17 : index
    %c0_114 = arith.constant 0 : index
    %240 = vector.load %arg3[%c17, %c0_114] : memref<32x128xf32, #tpu.memory_space<vmem>>, vector<1x128xf32>
    tpu.vector_store %arg3[%c17, %c0_114], %239 {strides = array<i32>} : memref<32x128xf32, #tpu.memory_space<vmem>>, vector<1x128xf32>,
    %c17_115 = arith.constant 17 : index
    %c0_116 = arith.constant 0 : index
    %241 = vector.load %arg4[%c17_115, %c0_116] : memref<32x128xf32, #tpu.memory_space<vmem>>, vector<1x128xf32>
    tpu.vector_store %arg4[%c17_115, %c0_116], %235 {strides = array<i32>} : memref<32x128xf32, #tpu.memory_space<vmem>>, vector<1x128xf32>,
    %242 = vector.extract_strided_slice %5 {offsets = [18, 0], sizes = [1, 128], strides = [1, 1]} : vector<32x128xf32> to vector<1x128xf32>
    %cst_117 = arith.constant 0.899999976 : f32
    %243 = vector.broadcast %cst_117 : f32 to vector<1x128xf32>
    %244 = arith.mulf %243, %235 : vector<1x128xf32>
    %245 = arith.addf %244, %242 : vector<1x128xf32>
    %cst_118 = arith.constant 1.000000e+00 : f32
    %246 = vector.broadcast %cst_118 : f32 to vector<1x128xf32>
    %247 = arith.mulf %246, %239 : vector<1x128xf32>
    %248 = arith.subf %245, %247 : vector<1x128xf32>
    %cst_119 = arith.constant 1.000000e+00 : f32
    %249 = vector.broadcast %cst_119 : f32 to vector<1x128xf32>
    %250 = arith.cmpf ogt, %248, %249 : vector<1x128xf32>
    %251 = arith.extui %250 : vector<1x128xi1> to vector<1x128xi32>
    %252 = arith.sitofp %251 : vector<1x128xi32> to vector<1x128xf32>
    %c18 = arith.constant 18 : index
    %c0_120 = arith.constant 0 : index
    %253 = vector.load %arg3[%c18, %c0_120] : memref<32x128xf32, #tpu.memory_space<vmem>>, vector<1x128xf32>
    tpu.vector_store %arg3[%c18, %c0_120], %252 {strides = array<i32>} : memref<32x128xf32, #tpu.memory_space<vmem>>, vector<1x128xf32>,
    %c18_121 = arith.constant 18 : index
    %c0_122 = arith.constant 0 : index
    %254 = vector.load %arg4[%c18_121, %c0_122] : memref<32x128xf32, #tpu.memory_space<vmem>>, vector<1x128xf32>
    tpu.vector_store %arg4[%c18_121, %c0_122], %248 {strides = array<i32>} : memref<32x128xf32, #tpu.memory_space<vmem>>, vector<1x128xf32>,
    %255 = vector.extract_strided_slice %5 {offsets = [19, 0], sizes = [1, 128], strides = [1, 1]} : vector<32x128xf32> to vector<1x128xf32>
    %cst_123 = arith.constant 0.899999976 : f32
    %256 = vector.broadcast %cst_123 : f32 to vector<1x128xf32>
    %257 = arith.mulf %256, %248 : vector<1x128xf32>
    %258 = arith.addf %257, %255 : vector<1x128xf32>
    %cst_124 = arith.constant 1.000000e+00 : f32
    %259 = vector.broadcast %cst_124 : f32 to vector<1x128xf32>
    %260 = arith.mulf %259, %252 : vector<1x128xf32>
    %261 = arith.subf %258, %260 : vector<1x128xf32>
    %cst_125 = arith.constant 1.000000e+00 : f32
    %262 = vector.broadcast %cst_125 : f32 to vector<1x128xf32>
    %263 = arith.cmpf ogt, %261, %262 : vector<1x128xf32>
    %264 = arith.extui %263 : vector<1x128xi1> to vector<1x128xi32>
    %265 = arith.sitofp %264 : vector<1x128xi32> to vector<1x128xf32>
    %c19 = arith.constant 19 : index
    %c0_126 = arith.constant 0 : index
    %266 = vector.load %arg3[%c19, %c0_126] : memref<32x128xf32, #tpu.memory_space<vmem>>, vector<1x128xf32>
    tpu.vector_store %arg3[%c19, %c0_126], %265 {strides = array<i32>} : memref<32x128xf32, #tpu.memory_space<vmem>>, vector<1x128xf32>,
    %c19_127 = arith.constant 19 : index
    %c0_128 = arith.constant 0 : index
    %267 = vector.load %arg4[%c19_127, %c0_128] : memref<32x128xf32, #tpu.memory_space<vmem>>, vector<1x128xf32>
    tpu.vector_store %arg4[%c19_127, %c0_128], %261 {strides = array<i32>} : memref<32x128xf32, #tpu.memory_space<vmem>>, vector<1x128xf32>,
    %268 = vector.extract_strided_slice %5 {offsets = [20, 0], sizes = [1, 128], strides = [1, 1]} : vector<32x128xf32> to vector<1x128xf32>
    %cst_129 = arith.constant 0.899999976 : f32
    %269 = vector.broadcast %cst_129 : f32 to vector<1x128xf32>
    %270 = arith.mulf %269, %261 : vector<1x128xf32>
    %271 = arith.addf %270, %268 : vector<1x128xf32>
    %cst_130 = arith.constant 1.000000e+00 : f32
    %272 = vector.broadcast %cst_130 : f32 to vector<1x128xf32>
    %273 = arith.mulf %272, %265 : vector<1x128xf32>
    %274 = arith.subf %271, %273 : vector<1x128xf32>
    %cst_131 = arith.constant 1.000000e+00 : f32
    %275 = vector.broadcast %cst_131 : f32 to vector<1x128xf32>
    %276 = arith.cmpf ogt, %274, %275 : vector<1x128xf32>
    %277 = arith.extui %276 : vector<1x128xi1> to vector<1x128xi32>
    %278 = arith.sitofp %277 : vector<1x128xi32> to vector<1x128xf32>
    %c20 = arith.constant 20 : index
    %c0_132 = arith.constant 0 : index
    %279 = vector.load %arg3[%c20, %c0_132] : memref<32x128xf32, #tpu.memory_space<vmem>>, vector<1x128xf32>
    tpu.vector_store %arg3[%c20, %c0_132], %278 {strides = array<i32>} : memref<32x128xf32, #tpu.memory_space<vmem>>, vector<1x128xf32>,
    %c20_133 = arith.constant 20 : index
    %c0_134 = arith.constant 0 : index
    %280 = vector.load %arg4[%c20_133, %c0_134] : memref<32x128xf32, #tpu.memory_space<vmem>>, vector<1x128xf32>
    tpu.vector_store %arg4[%c20_133, %c0_134], %274 {strides = array<i32>} : memref<32x128xf32, #tpu.memory_space<vmem>>, vector<1x128xf32>,
    %281 = vector.extract_strided_slice %5 {offsets = [21, 0], sizes = [1, 128], strides = [1, 1]} : vector<32x128xf32> to vector<1x128xf32>
    %cst_135 = arith.constant 0.899999976 : f32
    %282 = vector.broadcast %cst_135 : f32 to vector<1x128xf32>
    %283 = arith.mulf %282, %274 : vector<1x128xf32>
    %284 = arith.addf %283, %281 : vector<1x128xf32>
    %cst_136 = arith.constant 1.000000e+00 : f32
    %285 = vector.broadcast %cst_136 : f32 to vector<1x128xf32>
    %286 = arith.mulf %285, %278 : vector<1x128xf32>
    %287 = arith.subf %284, %286 : vector<1x128xf32>
    %cst_137 = arith.constant 1.000000e+00 : f32
    %288 = vector.broadcast %cst_137 : f32 to vector<1x128xf32>
    %289 = arith.cmpf ogt, %287, %288 : vector<1x128xf32>
    %290 = arith.extui %289 : vector<1x128xi1> to vector<1x128xi32>
    %291 = arith.sitofp %290 : vector<1x128xi32> to vector<1x128xf32>
    %c21 = arith.constant 21 : index
    %c0_138 = arith.constant 0 : index
    %292 = vector.load %arg3[%c21, %c0_138] : memref<32x128xf32, #tpu.memory_space<vmem>>, vector<1x128xf32>
    tpu.vector_store %arg3[%c21, %c0_138], %291 {strides = array<i32>} : memref<32x128xf32, #tpu.memory_space<vmem>>, vector<1x128xf32>,
    %c21_139 = arith.constant 21 : index
    %c0_140 = arith.constant 0 : index
    %293 = vector.load %arg4[%c21_139, %c0_140] : memref<32x128xf32, #tpu.memory_space<vmem>>, vector<1x128xf32>
    tpu.vector_store %arg4[%c21_139, %c0_140], %287 {strides = array<i32>} : memref<32x128xf32, #tpu.memory_space<vmem>>, vector<1x128xf32>,
    %294 = vector.extract_strided_slice %5 {offsets = [22, 0], sizes = [1, 128], strides = [1, 1]} : vector<32x128xf32> to vector<1x128xf32>
    %cst_141 = arith.constant 0.899999976 : f32
    %295 = vector.broadcast %cst_141 : f32 to vector<1x128xf32>
    %296 = arith.mulf %295, %287 : vector<1x128xf32>
    %297 = arith.addf %296, %294 : vector<1x128xf32>
    %cst_142 = arith.constant 1.000000e+00 : f32
    %298 = vector.broadcast %cst_142 : f32 to vector<1x128xf32>
    %299 = arith.mulf %298, %291 : vector<1x128xf32>
    %300 = arith.subf %297, %299 : vector<1x128xf32>
    %cst_143 = arith.constant 1.000000e+00 : f32
    %301 = vector.broadcast %cst_143 : f32 to vector<1x128xf32>
    %302 = arith.cmpf ogt, %300, %301 : vector<1x128xf32>
    %303 = arith.extui %302 : vector<1x128xi1> to vector<1x128xi32>
    %304 = arith.sitofp %303 : vector<1x128xi32> to vector<1x128xf32>
    %c22 = arith.constant 22 : index
    %c0_144 = arith.constant 0 : index
    %305 = vector.load %arg3[%c22, %c0_144] : memref<32x128xf32, #tpu.memory_space<vmem>>, vector<1x128xf32>
    tpu.vector_store %arg3[%c22, %c0_144], %304 {strides = array<i32>} : memref<32x128xf32, #tpu.memory_space<vmem>>, vector<1x128xf32>,
    %c22_145 = arith.constant 22 : index
    %c0_146 = arith.constant 0 : index
    %306 = vector.load %arg4[%c22_145, %c0_146] : memref<32x128xf32, #tpu.memory_space<vmem>>, vector<1x128xf32>
    tpu.vector_store %arg4[%c22_145, %c0_146], %300 {strides = array<i32>} : memref<32x128xf32, #tpu.memory_space<vmem>>, vector<1x128xf32>,
    %307 = vector.extract_strided_slice %5 {offsets = [23, 0], sizes = [1, 128], strides = [1, 1]} : vector<32x128xf32> to vector<1x128xf32>
    %cst_147 = arith.constant 0.899999976 : f32
    %308 = vector.broadcast %cst_147 : f32 to vector<1x128xf32>
    %309 = arith.mulf %308, %300 : vector<1x128xf32>
    %310 = arith.addf %309, %307 : vector<1x128xf32>
    %cst_148 = arith.constant 1.000000e+00 : f32
    %311 = vector.broadcast %cst_148 : f32 to vector<1x128xf32>
    %312 = arith.mulf %311, %304 : vector<1x128xf32>
    %313 = arith.subf %310, %312 : vector<1x128xf32>
    %cst_149 = arith.constant 1.000000e+00 : f32
    %314 = vector.broadcast %cst_149 : f32 to vector<1x128xf32>
    %315 = arith.cmpf ogt, %313, %314 : vector<1x128xf32>
    %316 = arith.extui %315 : vector<1x128xi1> to vector<1x128xi32>
    %317 = arith.sitofp %316 : vector<1x128xi32> to vector<1x128xf32>
    %c23 = arith.constant 23 : index
    %c0_150 = arith.constant 0 : index
    %318 = vector.load %arg3[%c23, %c0_150] : memref<32x128xf32, #tpu.memory_space<vmem>>, vector<1x128xf32>
    tpu.vector_store %arg3[%c23, %c0_150], %317 {strides = array<i32>} : memref<32x128xf32, #tpu.memory_space<vmem>>, vector<1x128xf32>,
    %c23_151 = arith.constant 23 : index
    %c0_152 = arith.constant 0 : index
    %319 = vector.load %arg4[%c23_151, %c0_152] : memref<32x128xf32, #tpu.memory_space<vmem>>, vector<1x128xf32>
    tpu.vector_store %arg4[%c23_151, %c0_152], %313 {strides = array<i32>} : memref<32x128xf32, #tpu.memory_space<vmem>>, vector<1x128xf32>,
    %320 = vector.extract_strided_slice %5 {offsets = [24, 0], sizes = [1, 128], strides = [1, 1]} : vector<32x128xf32> to vector<1x128xf32>
    %cst_153 = arith.constant 0.899999976 : f32
    %321 = vector.broadcast %cst_153 : f32 to vector<1x128xf32>
    %322 = arith.mulf %321, %313 : vector<1x128xf32>
    %323 = arith.addf %322, %320 : vector<1x128xf32>
    %cst_154 = arith.constant 1.000000e+00 : f32
    %324 = vector.broadcast %cst_154 : f32 to vector<1x128xf32>
    %325 = arith.mulf %324, %317 : vector<1x128xf32>
    %326 = arith.subf %323, %325 : vector<1x128xf32>
    %cst_155 = arith.constant 1.000000e+00 : f32
    %327 = vector.broadcast %cst_155 : f32 to vector<1x128xf32>
    %328 = arith.cmpf ogt, %326, %327 : vector<1x128xf32>
    %329 = arith.extui %328 : vector<1x128xi1> to vector<1x128xi32>
    %330 = arith.sitofp %329 : vector<1x128xi32> to vector<1x128xf32>
    %c24 = arith.constant 24 : index
    %c0_156 = arith.constant 0 : index
    %331 = vector.load %arg3[%c24, %c0_156] : memref<32x128xf32, #tpu.memory_space<vmem>>, vector<1x128xf32>
    tpu.vector_store %arg3[%c24, %c0_156], %330 {strides = array<i32>} : memref<32x128xf32, #tpu.memory_space<vmem>>, vector<1x128xf32>,
    %c24_157 = arith.constant 24 : index
    %c0_158 = arith.constant 0 : index
    %332 = vector.load %arg4[%c24_157, %c0_158] : memref<32x128xf32, #tpu.memory_space<vmem>>, vector<1x128xf32>
    tpu.vector_store %arg4[%c24_157, %c0_158], %326 {strides = array<i32>} : memref<32x128xf32, #tpu.memory_space<vmem>>, vector<1x128xf32>,
    %333 = vector.extract_strided_slice %5 {offsets = [25, 0], sizes = [1, 128], strides = [1, 1]} : vector<32x128xf32> to vector<1x128xf32>
    %cst_159 = arith.constant 0.899999976 : f32
    %334 = vector.broadcast %cst_159 : f32 to vector<1x128xf32>
    %335 = arith.mulf %334, %326 : vector<1x128xf32>
    %336 = arith.addf %335, %333 : vector<1x128xf32>
    %cst_160 = arith.constant 1.000000e+00 : f32
    %337 = vector.broadcast %cst_160 : f32 to vector<1x128xf32>
    %338 = arith.mulf %337, %330 : vector<1x128xf32>
    %339 = arith.subf %336, %338 : vector<1x128xf32>
    %cst_161 = arith.constant 1.000000e+00 : f32
    %340 = vector.broadcast %cst_161 : f32 to vector<1x128xf32>
    %341 = arith.cmpf ogt, %339, %340 : vector<1x128xf32>
    %342 = arith.extui %341 : vector<1x128xi1> to vector<1x128xi32>
    %343 = arith.sitofp %342 : vector<1x128xi32> to vector<1x128xf32>
    %c25 = arith.constant 25 : index
    %c0_162 = arith.constant 0 : index
    %344 = vector.load %arg3[%c25, %c0_162] : memref<32x128xf32, #tpu.memory_space<vmem>>, vector<1x128xf32>
    tpu.vector_store %arg3[%c25, %c0_162], %343 {strides = array<i32>} : memref<32x128xf32, #tpu.memory_space<vmem>>, vector<1x128xf32>,
    %c25_163 = arith.constant 25 : index
    %c0_164 = arith.constant 0 : index
    %345 = vector.load %arg4[%c25_163, %c0_164] : memref<32x128xf32, #tpu.memory_space<vmem>>, vector<1x128xf32>
    tpu.vector_store %arg4[%c25_163, %c0_164], %339 {strides = array<i32>} : memref<32x128xf32, #tpu.memory_space<vmem>>, vector<1x128xf32>,
    %346 = vector.extract_strided_slice %5 {offsets = [26, 0], sizes = [1, 128], strides = [1, 1]} : vector<32x128xf32> to vector<1x128xf32>
    %cst_165 = arith.constant 0.899999976 : f32
    %347 = vector.broadcast %cst_165 : f32 to vector<1x128xf32>
    %348 = arith.mulf %347, %339 : vector<1x128xf32>
    %349 = arith.addf %348, %346 : vector<1x128xf32>
    %cst_166 = arith.constant 1.000000e+00 : f32
    %350 = vector.broadcast %cst_166 : f32 to vector<1x128xf32>
    %351 = arith.mulf %350, %343 : vector<1x128xf32>
    %352 = arith.subf %349, %351 : vector<1x128xf32>
    %cst_167 = arith.constant 1.000000e+00 : f32
    %353 = vector.broadcast %cst_167 : f32 to vector<1x128xf32>
    %354 = arith.cmpf ogt, %352, %353 : vector<1x128xf32>
    %355 = arith.extui %354 : vector<1x128xi1> to vector<1x128xi32>
    %356 = arith.sitofp %355 : vector<1x128xi32> to vector<1x128xf32>
    %c26 = arith.constant 26 : index
    %c0_168 = arith.constant 0 : index
    %357 = vector.load %arg3[%c26, %c0_168] : memref<32x128xf32, #tpu.memory_space<vmem>>, vector<1x128xf32>
    tpu.vector_store %arg3[%c26, %c0_168], %356 {strides = array<i32>} : memref<32x128xf32, #tpu.memory_space<vmem>>, vector<1x128xf32>,
    %c26_169 = arith.constant 26 : index
    %c0_170 = arith.constant 0 : index
    %358 = vector.load %arg4[%c26_169, %c0_170] : memref<32x128xf32, #tpu.memory_space<vmem>>, vector<1x128xf32>
    tpu.vector_store %arg4[%c26_169, %c0_170], %352 {strides = array<i32>} : memref<32x128xf32, #tpu.memory_space<vmem>>, vector<1x128xf32>,
    %359 = vector.extract_strided_slice %5 {offsets = [27, 0], sizes = [1, 128], strides = [1, 1]} : vector<32x128xf32> to vector<1x128xf32>
    %cst_171 = arith.constant 0.899999976 : f32
    %360 = vector.broadcast %cst_171 : f32 to vector<1x128xf32>
    %361 = arith.mulf %360, %352 : vector<1x128xf32>
    %362 = arith.addf %361, %359 : vector<1x128xf32>
    %cst_172 = arith.constant 1.000000e+00 : f32
    %363 = vector.broadcast %cst_172 : f32 to vector<1x128xf32>
    %364 = arith.mulf %363, %356 : vector<1x128xf32>
    %365 = arith.subf %362, %364 : vector<1x128xf32>
    %cst_173 = arith.constant 1.000000e+00 : f32
    %366 = vector.broadcast %cst_173 : f32 to vector<1x128xf32>
    %367 = arith.cmpf ogt, %365, %366 : vector<1x128xf32>
    %368 = arith.extui %367 : vector<1x128xi1> to vector<1x128xi32>
    %369 = arith.sitofp %368 : vector<1x128xi32> to vector<1x128xf32>
    %c27 = arith.constant 27 : index
    %c0_174 = arith.constant 0 : index
    %370 = vector.load %arg3[%c27, %c0_174] : memref<32x128xf32, #tpu.memory_space<vmem>>, vector<1x128xf32>
    tpu.vector_store %arg3[%c27, %c0_174], %369 {strides = array<i32>} : memref<32x128xf32, #tpu.memory_space<vmem>>, vector<1x128xf32>,
    %c27_175 = arith.constant 27 : index
    %c0_176 = arith.constant 0 : index
    %371 = vector.load %arg4[%c27_175, %c0_176] : memref<32x128xf32, #tpu.memory_space<vmem>>, vector<1x128xf32>
    tpu.vector_store %arg4[%c27_175, %c0_176], %365 {strides = array<i32>} : memref<32x128xf32, #tpu.memory_space<vmem>>, vector<1x128xf32>,
    %372 = vector.extract_strided_slice %5 {offsets = [28, 0], sizes = [1, 128], strides = [1, 1]} : vector<32x128xf32> to vector<1x128xf32>
    %cst_177 = arith.constant 0.899999976 : f32
    %373 = vector.broadcast %cst_177 : f32 to vector<1x128xf32>
    %374 = arith.mulf %373, %365 : vector<1x128xf32>
    %375 = arith.addf %374, %372 : vector<1x128xf32>
    %cst_178 = arith.constant 1.000000e+00 : f32
    %376 = vector.broadcast %cst_178 : f32 to vector<1x128xf32>
    %377 = arith.mulf %376, %369 : vector<1x128xf32>
    %378 = arith.subf %375, %377 : vector<1x128xf32>
    %cst_179 = arith.constant 1.000000e+00 : f32
    %379 = vector.broadcast %cst_179 : f32 to vector<1x128xf32>
    %380 = arith.cmpf ogt, %378, %379 : vector<1x128xf32>
    %381 = arith.extui %380 : vector<1x128xi1> to vector<1x128xi32>
    %382 = arith.sitofp %381 : vector<1x128xi32> to vector<1x128xf32>
    %c28 = arith.constant 28 : index
    %c0_180 = arith.constant 0 : index
    %383 = vector.load %arg3[%c28, %c0_180] : memref<32x128xf32, #tpu.memory_space<vmem>>, vector<1x128xf32>
    tpu.vector_store %arg3[%c28, %c0_180], %382 {strides = array<i32>} : memref<32x128xf32, #tpu.memory_space<vmem>>, vector<1x128xf32>,
    %c28_181 = arith.constant 28 : index
    %c0_182 = arith.constant 0 : index
    %384 = vector.load %arg4[%c28_181, %c0_182] : memref<32x128xf32, #tpu.memory_space<vmem>>, vector<1x128xf32>
    tpu.vector_store %arg4[%c28_181, %c0_182], %378 {strides = array<i32>} : memref<32x128xf32, #tpu.memory_space<vmem>>, vector<1x128xf32>,
    %385 = vector.extract_strided_slice %5 {offsets = [29, 0], sizes = [1, 128], strides = [1, 1]} : vector<32x128xf32> to vector<1x128xf32>
    %cst_183 = arith.constant 0.899999976 : f32
    %386 = vector.broadcast %cst_183 : f32 to vector<1x128xf32>
    %387 = arith.mulf %386, %378 : vector<1x128xf32>
    %388 = arith.addf %387, %385 : vector<1x128xf32>
    %cst_184 = arith.constant 1.000000e+00 : f32
    %389 = vector.broadcast %cst_184 : f32 to vector<1x128xf32>
    %390 = arith.mulf %389, %382 : vector<1x128xf32>
    %391 = arith.subf %388, %390 : vector<1x128xf32>
    %cst_185 = arith.constant 1.000000e+00 : f32
    %392 = vector.broadcast %cst_185 : f32 to vector<1x128xf32>
    %393 = arith.cmpf ogt, %391, %392 : vector<1x128xf32>
    %394 = arith.extui %393 : vector<1x128xi1> to vector<1x128xi32>
    %395 = arith.sitofp %394 : vector<1x128xi32> to vector<1x128xf32>
    %c29 = arith.constant 29 : index
    %c0_186 = arith.constant 0 : index
    %396 = vector.load %arg3[%c29, %c0_186] : memref<32x128xf32, #tpu.memory_space<vmem>>, vector<1x128xf32>
    tpu.vector_store %arg3[%c29, %c0_186], %395 {strides = array<i32>} : memref<32x128xf32, #tpu.memory_space<vmem>>, vector<1x128xf32>,
    %c29_187 = arith.constant 29 : index
    %c0_188 = arith.constant 0 : index
    %397 = vector.load %arg4[%c29_187, %c0_188] : memref<32x128xf32, #tpu.memory_space<vmem>>, vector<1x128xf32>
    tpu.vector_store %arg4[%c29_187, %c0_188], %391 {strides = array<i32>} : memref<32x128xf32, #tpu.memory_space<vmem>>, vector<1x128xf32>,
    %398 = vector.extract_strided_slice %5 {offsets = [30, 0], sizes = [1, 128], strides = [1, 1]} : vector<32x128xf32> to vector<1x128xf32>
    %cst_189 = arith.constant 0.899999976 : f32
    %399 = vector.broadcast %cst_189 : f32 to vector<1x128xf32>
    %400 = arith.mulf %399, %391 : vector<1x128xf32>
    %401 = arith.addf %400, %398 : vector<1x128xf32>
    %cst_190 = arith.constant 1.000000e+00 : f32
    %402 = vector.broadcast %cst_190 : f32 to vector<1x128xf32>
    %403 = arith.mulf %402, %395 : vector<1x128xf32>
    %404 = arith.subf %401, %403 : vector<1x128xf32>
    %cst_191 = arith.constant 1.000000e+00 : f32
    %405 = vector.broadcast %cst_191 : f32 to vector<1x128xf32>
    %406 = arith.cmpf ogt, %404, %405 : vector<1x128xf32>
    %407 = arith.extui %406 : vector<1x128xi1> to vector<1x128xi32>
    %408 = arith.sitofp %407 : vector<1x128xi32> to vector<1x128xf32>
    %c30 = arith.constant 30 : index
    %c0_192 = arith.constant 0 : index
    %409 = vector.load %arg3[%c30, %c0_192] : memref<32x128xf32, #tpu.memory_space<vmem>>, vector<1x128xf32>
    tpu.vector_store %arg3[%c30, %c0_192], %408 {strides = array<i32>} : memref<32x128xf32, #tpu.memory_space<vmem>>, vector<1x128xf32>,
    %c30_193 = arith.constant 30 : index
    %c0_194 = arith.constant 0 : index
    %410 = vector.load %arg4[%c30_193, %c0_194] : memref<32x128xf32, #tpu.memory_space<vmem>>, vector<1x128xf32>
    tpu.vector_store %arg4[%c30_193, %c0_194], %404 {strides = array<i32>} : memref<32x128xf32, #tpu.memory_space<vmem>>, vector<1x128xf32>,
    %411 = vector.extract_strided_slice %5 {offsets = [31, 0], sizes = [1, 128], strides = [1, 1]} : vector<32x128xf32> to vector<1x128xf32>
    %cst_195 = arith.constant 0.899999976 : f32
    %412 = vector.broadcast %cst_195 : f32 to vector<1x128xf32>
    %413 = arith.mulf %412, %404 : vector<1x128xf32>
    %414 = arith.addf %413, %411 : vector<1x128xf32>
    %cst_196 = arith.constant 1.000000e+00 : f32
    %415 = vector.broadcast %cst_196 : f32 to vector<1x128xf32>
    %416 = arith.mulf %415, %408 : vector<1x128xf32>
    %417 = arith.subf %414, %416 : vector<1x128xf32>
    %cst_197 = arith.constant 1.000000e+00 : f32
    %418 = vector.broadcast %cst_197 : f32 to vector<1x128xf32>
    %419 = arith.cmpf ogt, %417, %418 : vector<1x128xf32>
    %420 = arith.extui %419 : vector<1x128xi1> to vector<1x128xi32>
    %421 = arith.sitofp %420 : vector<1x128xi32> to vector<1x128xf32>
    %c31 = arith.constant 31 : index
    %c0_198 = arith.constant 0 : index
    %422 = vector.load %arg3[%c31, %c0_198] : memref<32x128xf32, #tpu.memory_space<vmem>>, vector<1x128xf32>
    tpu.vector_store %arg3[%c31, %c0_198], %421 {strides = array<i32>} : memref<32x128xf32, #tpu.memory_space<vmem>>, vector<1x128xf32>,
    %c31_199 = arith.constant 31 : index
    %c0_200 = arith.constant 0 : index
    %423 = vector.load %arg4[%c31_199, %c0_200] : memref<32x128xf32, #tpu.memory_space<vmem>>, vector<1x128xf32>
    tpu.vector_store %arg4[%c31_199, %c0_200], %417 {strides = array<i32>} : memref<32x128xf32, #tpu.memory_space<vmem>>, vector<1x128xf32>,
    %c0_201 = arith.constant 0 : index
    %c0_202 = arith.constant 0 : index
    %424 = vector.load %arg5[%c0_201, %c0_202] : memref<1x128xf32, #tpu.memory_space<vmem>>, vector<1x128xf32>
    tpu.vector_store %arg5[%c0_201, %c0_202], %417 {strides = array<i32>} : memref<1x128xf32, #tpu.memory_space<vmem>>, vector<1x128xf32>,
    %c0_203 = arith.constant 0 : index
    %c0_204 = arith.constant 0 : index
    %425 = vector.load %arg6[%c0_203, %c0_204] : memref<1x128xf32, #tpu.memory_space<vmem>>, vector<1x128xf32>
    tpu.vector_store %arg6[%c0_203, %c0_204], %421 {strides = array<i32>} : memref<1x128xf32, #tpu.memory_space<vmem>>, vector<1x128xf32>,
    return
  }
  func.func @transform_0(%arg0: i32) -> (i32, i32) {
    %c0_i32 = arith.constant 0 : i32
    %c0_i32_0 = arith.constant 0 : i32
    return %arg0, %c0_i32 : i32, i32
  }
  func.func @transform_1(%arg0: i32) -> (i32, i32) {
    %c0_i32 = arith.constant 0 : i32
    %c0_i32_0 = arith.constant 0 : i32
    %c0_i32_1 = arith.constant 0 : i32
    return %c0_i32, %c0_i32_0 : i32, i32
  }
  func.func @transform_2(%arg0: i32) -> (i32, i32) {
    %c0_i32 = arith.constant 0 : i32
    %c0_i32_0 = arith.constant 0 : i32
    return %arg0, %c0_i32 : i32, i32
  }
  func.func @transform_3(%arg0: i32) -> (i32, i32) {
    %c0_i32 = arith.constant 0 : i32
    %c0_i32_0 = arith.constant 0 : i32
    return %arg0, %c0_i32 : i32, i32
  }
}

</mosaic_0001>

<bundles_post_ra>
// kernel: leaky_net_forward.1
= control target key start
LH: loop header
LB: loop body
LE: loop exit
PB: predicated region body
PF: predicated region fallthrough
CT: control target
= control target key end

     0   :  { %v566_v38 = vmov 0.0   ;;  %s963_s1 = inlined_call_operand.vmem [shape: f32[256,128], index: 1, kind: input, shape index: {}]   ;;  %s964_s0 = inlined_call_operand.vmem [shape: f32[32,256], index: 0, kind: input, shape index: {}]   ;;  %s965_s3 = inlined_call_operand.vmem [shape: f32[32,128], index: 3, kind: output, shape index: {1}]   ;;  %s966_s2 = inlined_call_operand.vmem [shape: f32[32,128], index: 2, kind: output, shape index: {0}]  }
   0x1   :  { %v42_v0 = vld [vmem:[%s963_s1 + $0x78] sm:$0xff]  ;;  %v41_v2 = vld [vmem:[%s963_s1 + $0x70] sm:$0xff]  ;;  %v40_v4 = vld [vmem:[%s963_s1 + $0x68] sm:$0xff]  ;;  %17 = vst [vmem:[#allocation2] sm:$0x1] %v566_v38 }
   0x2   :  { %v58_v1 = vld [vmem:[%s963_s1 + $0xf8] sm:$0xff]  ;;  %59 = vmatpush.msra.mxu0 %v42_v0  ;;  %v57_v3 = vld [vmem:[%s963_s1 + $0xf0] sm:$0xff]  ;;  %v56_v5 = vld [vmem:[%s963_s1 + $0xe8] sm:$0xff]  ;;  %533 = vmatpush.msra.mxu2 %v42_v0  ;;  %18 = vst [vmem:[#allocation3] sm:$0x1] %v566_v38 }
   0x3   :  { %88 = vmatpush.msra.mxu1 %v58_v1  ;;  %549 = vmatpush.msra.mxu3 %v58_v1  ;;  %v39_v6 = vld [vmem:[%s963_s1 + $0x60] sm:$0xff]  ;;  %v38_v8 = vld [vmem:[%s963_s1 + $0x58] sm:$0xff]  ;;  %v37_v10 = vld [vmem:[%s963_s1 + $0x50] sm:$0xff] }
   0x4   :  { %60 = vmatpush.msra.mxu0 %v41_v2  ;;  %v55_v7 = vld [vmem:[%s963_s1 + $0xe0] sm:$0xff]  ;;  %534 = vmatpush.msra.mxu2 %v41_v2  ;;  %v54_v9 = vld [vmem:[%s963_s1 + $0xd8] sm:$0xff]  ;;  %v53_v11 = vld [vmem:[%s963_s1 + $0xd0] sm:$0xff] }
   0x5   :  { %89 = vmatpush.msra.mxu1 %v57_v3  ;;  %550 = vmatpush.msra.mxu3 %v57_v3  ;;  %v36_v12 = vld [vmem:[%s963_s1 + $0x48] sm:$0xff]  ;;  %v35_v14 = vld [vmem:[%s963_s1 + $0x40] sm:$0xff]  ;;  %v34_v16 = vld [vmem:[%s963_s1 + $0x38] sm:$0xff] }
   0x6   :  { %61 = vmatpush.msra.mxu0 %v40_v4  ;;  %535 = vmatpush.msra.mxu2 %v40_v4  ;;  %v52_v13 = vld [vmem:[%s963_s1 + $0xc8] sm:$0xff]  ;;  %v51_v15 = vld [vmem:[%s963_s1 + $0xc0] sm:$0xff]  ;;  %v50_v17 = vld [vmem:[%s963_s1 + $0xb8] sm:$0xff] }
   0x7   :  { %90 = vmatpush.msra.mxu1 %v56_v5  ;;  %551 = vmatpush.msra.mxu3 %v56_v5  ;;  %v33_v18 = vld [vmem:[%s963_s1 + $0x30] sm:$0xff]  ;;  %v32_v20 = vld [vmem:[%s963_s1 + $0x28] sm:$0xff]  ;;  %v31_v22 = vld [vmem:[%s963_s1 + $0x20] sm:$0xff] }
   0x8   :  { %62 = vmatpush.msra.mxu0 %v39_v6  ;;  %536 = vmatpush.msra.mxu2 %v39_v6  ;;  %v49_v19 = vld [vmem:[%s963_s1 + $0xb0] sm:$0xff]  ;;  %v48_v21 = vld [vmem:[%s963_s1 + $0xa8] sm:$0xff]  ;;  %v47_v23 = vld [vmem:[%s963_s1 + $0xa0] sm:$0xff] }
   0x9   :  { %91 = vmatpush.msra.mxu1 %v55_v7  ;;  %552 = vmatpush.msra.mxu3 %v55_v7  ;;  %v30_v24 = vld [vmem:[%s963_s1 + $0x18] sm:$0xff]  ;;  %v29_v26 = vld [vmem:[%s963_s1 + $0x10] sm:$0xff]  ;;  %v28_v28 = vld [vmem:[%s963_s1 + $0x8] sm:$0xff] }
   0xa   :  { %63 = vmatpush.msra.mxu0 %v38_v8  ;;  %537 = vmatpush.msra.mxu2 %v38_v8  ;;  %v46_v25 = vld [vmem:[%s963_s1 + $0x98] sm:$0xff]  ;;  %v45_v27 = vld [vmem:[%s963_s1 + $0x90] sm:$0xff]  ;;  %v44_v29 = vld [vmem:[%s963_s1 + $0x88] sm:$0xff] }
   0xb   :  { %92 = vmatpush.msra.mxu1 %v54_v9  ;;  %553 = vmatpush.msra.mxu3 %v54_v9  ;;  %v27_v30 = vld [vmem:[%s963_s1] sm:$0xff]  ;;  %v20_v33 = vld [vmem:[%s964_s0 + $0x8] sm:$0xff]  ;;  %v21_v36 = vld [vmem:[%s964_s0 + $0x10] sm:$0xff] }
   0xc   :  { %64 = vmatpush.msra.mxu0 %v37_v10  ;;  %538 = vmatpush.msra.mxu2 %v37_v10  ;;  %v43_v31 = vld [vmem:[%s963_s1 + $0x80] sm:$0xff]  ;;  %v24_v35 = vld [vmem:[%s964_s0 + $0x28] sm:$0xff]  ;;  %v22_v37 = vld [vmem:[%s964_s0 + $0x18] sm:$0xff] }
   0xd   :  { %93 = vmatpush.msra.mxu1 %v53_v11  ;;  %554 = vmatpush.msra.mxu3 %v53_v11  ;;  %v19_v32 = vld [vmem:[%s964_s0] sm:$0xff]  ;;  %v117_v39 = vld [vmem:[#allocation2] sm:$0x1]  ;;  %v118_v44 = vld [vmem:[#allocation3] sm:$0x1] }
   0xe   :  { %65 = vmatpush.msra.mxu0 %v36_v12  ;;  %539 = vmatpush.msra.mxu2 %v36_v12  ;;  %v23_v34 = vld [vmem:[%s964_s0 + $0x20] sm:$0xff]  ;;  %v119_v40 = vmul.f32 0.9, %v117_v39  ;;  %v25_v46 = vld [vmem:[%s964_s0 + $0x30] sm:$0xff]  ;;  %v26_v47 = vld [vmem:[%s964_s0 + $0x38] sm:$0xff] }
   0xf   :  { %94 = vmatpush.msra.mxu1 %v52_v13  ;;  %555 = vmatpush.msra.mxu3 %v52_v13 }
  0x10   :  { %66 = vmatpush.msra.mxu0 %v35_v14  ;;  %540 = vmatpush.msra.mxu2 %v35_v14 }
  0x11   :  { %95 = vmatpush.msra.mxu1 %v51_v15  ;;  %556 = vmatpush.msra.mxu3 %v51_v15 }
  0x12   :  { %67 = vmatpush.msra.mxu0 %v34_v16  ;;  %541 = vmatpush.msra.mxu2 %v34_v16 }
  0x13   :  { %96 = vmatpush.msra.mxu1 %v50_v17  ;;  %557 = vmatpush.msra.mxu3 %v50_v17 }
  0x14   :  { %68 = vmatpush.msra.mxu0 %v33_v18  ;;  %542 = vmatpush.msra.mxu2 %v33_v18 }
  0x15   :  { %97 = vmatpush.msra.mxu1 %v49_v19  ;;  %558 = vmatpush.msra.mxu3 %v49_v19 }
  0x16   :  { %69 = vmatpush.msra.mxu0 %v32_v20  ;;  %543 = vmatpush.msra.mxu2 %v32_v20 }
  0x17   :  { %98 = vmatpush.msra.mxu1 %v48_v21  ;;  %559 = vmatpush.msra.mxu3 %v48_v21 }
  0x18   :  { %70 = vmatpush.msra.mxu0 %v31_v22  ;;  %544 = vmatpush.msra.mxu2 %v31_v22 }
  0x19   :  { %99 = vmatpush.msra.mxu1 %v47_v23  ;;  %560 = vmatpush.msra.mxu3 %v47_v23 }
  0x1a   :  { %71 = vmatpush.msra.mxu0 %v30_v24  ;;  %545 = vmatpush.msra.mxu2 %v30_v24 }
  0x1b   :  { %100 = vmatpush.msra.mxu1 %v46_v25  ;;  %561 = vmatpush.msra.mxu3 %v46_v25 }
  0x1c   :  { %72 = vmatpush.msra.mxu0 %v29_v26  ;;  %546 = vmatpush.msra.mxu2 %v29_v26 }
  0x1d   :  { %101 = vmatpush.msra.mxu1 %v45_v27  ;;  %562 = vmatpush.msra.mxu3 %v45_v27 }
  0x1e   :  { %73 = vmatpush.msra.mxu0 %v28_v28  ;;  %547 = vmatpush.msra.mxu2 %v28_v28 }
  0x1f   :  { %102 = vmatpush.msra.mxu1 %v44_v29  ;;  %563 = vmatpush.msra.mxu3 %v44_v29 }
  0x20   :  { %74 = vmatpush.msra.mxu0 %v27_v30  ;;  %548 = vmatpush.msra.mxu2 %v27_v30 }
  0x21   :  { %103 = vmatpush.msra.mxu1 %v43_v31  ;;  %75 = vmatmul.f32.vlgmr.msra.gmra.mxu0 %v19_v32 }
  0x22   :  { %104 = vmatmul.f32.vlgmr.msra.gmra.mxu1 %v20_v33  ;;  %564 = vmatpush.msra.mxu3 %v43_v31 }
  0x23   :  { %81 = vmatmul.f32.vlgmr.msra.gmra.mxu2 %v23_v34  ;;  %110 = vmatmul.f32.vlgmr.msra.gmra.mxu3 %v24_v35 }
  0x29   :  { %78 = vmatmul.f32.gmra.mxu0 %v21_v36 }
  0x2a   :  { %107 = vmatmul.f32.gmra.mxu1 %v22_v37 }
  0x2b   :  { %84 = vmatmul.f32.gmra.mxu2 %v25_v46  ;;  %113 = vmatmul.f32.gmra.mxu3 %v26_v47 }
  0x9e   :  { %v76_v41 = vpop.f32.mrf.mxu0 }
  0x9f   :  { %v105_v42 = vpop.f32.mrf.mxu1 }
  0xa0   :  { %v106_v43 = vadd.f32 %v105_v42, %v76_v41 }
  0xa2   :  { %v120_v45 = vadd.f32 %v119_v40, %v106_v43  ;;  %129 = vst [vmem:[#allocation1] sm:$0xff] %v106_v43 }
  0xa4   :  { %v121_v48 = vsub.f32 %v120_v45, %v118_v44 }
  0xa6   :  { %vm122_vm0 = vcmp.gt.f32.partialorder %v121_v48, 1.0  ;;  %126 = vst [vmem:[%s965_s3] sm:$0x1] %v121_v48  ;;  %v127_v50 = vmul.f32 0.9, %v121_v48  ;;  %v79_v14 = vpop.f32.mrf.mxu0 }
  0xa7   :  { %v501_v49 = vsel %vm122_vm0, 1.0, %v566_v38  ;;  %v108_v15 = vpop.f32.mrf.mxu1 }
  0xa8   :  { %125 = vst [vmem:[%s966_s2] sm:$0x1] %v501_v49  ;;  %v751_v17 = vadd.f32 %v108_v15, %v79_v14 }
  0xa9   :  { %v131_v51 = vld [vmem:[#allocation1 + $0x1] ss:$9 sm:$0xff] }
  0xaa   :  { %v133_v52 = vadd.f32 %v131_v51, %v127_v50  ;;  %141 = vst [vmem:[#allocation1] sm:$0xff] %v106_v43 }
  0xac   :  { %v134_v53 = vsub.f32 %v133_v52, %v501_v49 }
  0xae   :  { %vm135_vm1 = vcmp.gt.f32.partialorder %v134_v53, 1.0  ;;  %139 = vst [vmem:[%s965_s3 + $0x1] sm:$0x1] %v134_v53  ;;  %v140_v55 = vmul.f32 0.9, %v134_v53 }
  0xaf   :  { %v502_v54 = vsel %vm135_vm1, 1.0, %v566_v38 }
  0xb0   :  { %138 = vst [vmem:[%s966_s2 + $0x1] sm:$0x1] %v502_v54 }
  0xb1   :  { %v143_v56 = vld [vmem:[#allocation1 + $0x2] ss:$9 sm:$0xff] }
  0xb2   :  { %v145_v57 = vadd.f32 %v143_v56, %v140_v55  ;;  %153 = vst [vmem:[#allocation1] sm:$0xff] %v106_v43 }
  0xb4   :  { %v146_v58 = vsub.f32 %v145_v57, %v502_v54  ;;  %v82_v57 = vpop.f32.mrf.mxu2 }
  0xb6   :  { %vm147_vm2 = vcmp.gt.f32.partialorder %v146_v58, 1.0  ;;  %151 = vst [vmem:[%s965_s3 + $0x2] sm:$0x1] %v146_v58  ;;  %v152_v60 = vmul.f32 0.9, %v146_v58  ;;  %v111_v58 = vpop.f32.mrf.mxu3 }
  0xb7   :  { %v503_v59 = vsel %vm147_vm2, 1.0, %v566_v38 }
  0xb8   :  { %150 = vst [vmem:[%s966_s2 + $0x2] sm:$0x1] %v503_v59 }
  0xb9   :  { %v155_v61 = vld [vmem:[#allocation1 + $0x3] ss:$9 sm:$0xff] }
  0xba   :  { %v157_v62 = vadd.f32 %v155_v61, %v152_v60  ;;  %165 = vst [vmem:[#allocation1] sm:$0xff] %v106_v43  ;;  %v817_v60 = vadd.f32 %v111_v58, %v82_v57 }
  0xbc   :  { %v158_v63 = vsub.f32 %v157_v62, %v503_v59 }
  0xbe   :  { %vm159_vm3 = vcmp.gt.f32.partialorder %v158_v63, 1.0  ;;  %163 = vst [vmem:[%s965_s3 + $0x3] sm:$0x1] %v158_v63  ;;  %v164_v1 = vmul.f32 0.9, %v158_v63 }
  0xbf   :  { %v504_v0 = vsel %vm159_vm3, 1.0, %v566_v38 }
  0xc0   :  { %162 = vst [vmem:[%s966_s2 + $0x3] sm:$0x1] %v504_v0 }
  0xc1   :  { %v167_v2 = vld [vmem:[#allocation1 + $0x4] ss:$9 sm:$0xff] }
  0xc2   :  { %177 = vst [vmem:[#allocation1] sm:$0xff] %v106_v43  ;;  %v169_v3 = vadd.f32 %v167_v2, %v164_v1 }
  0xc4   :  { %v170_v4 = vsub.f32 %v169_v3, %v504_v0 }
  0xc6   :  { %vm171_vm4 = vcmp.gt.f32.partialorder %v170_v4, 1.0  ;;  %175 = vst [vmem:[%s965_s3 + $0x4] sm:$0x1] %v170_v4  ;;  %v176_v6 = vmul.f32 0.9, %v170_v4 }
  0xc7   :  { %v505_v5 = vsel %vm171_vm4, 1.0, %v566_v38 }
  0xc8   :  { %174 = vst [vmem:[%s966_s2 + $0x4] sm:$0x1] %v505_v5 }
  0xc9   :  { %v179_v7 = vld [vmem:[#allocation1 + $0x5] ss:$9 sm:$0xff] }
  0xca   :  { %189 = vst [vmem:[#allocation1] sm:$0xff] %v106_v43  ;;  %v181_v8 = vadd.f32 %v179_v7, %v176_v6 }
  0xcc   :  { %v182_v9 = vsub.f32 %v181_v8, %v505_v5 }
  0xce   :  { %vm183_vm5 = vcmp.gt.f32.partialorder %v182_v9, 1.0  ;;  %187 = vst [vmem:[%s965_s3 + $0x5] sm:$0x1] %v182_v9  ;;  %v188_v11 = vmul.f32 0.9, %v182_v9 }
  0xcf   :  { %v506_v10 = vsel %vm183_vm5, 1.0, %v566_v38 }
  0xd0   :  { %186 = vst [vmem:[%s966_s2 + $0x5] sm:$0x1] %v506_v10 }
  0xd1   :  { %v191_v12 = vld [vmem:[#allocation1 + $0x6] ss:$9 sm:$0xff] }
  0xd2   :  { %201 = vst [vmem:[#allocation1] sm:$0xff] %v106_v43  ;;  %v193_v13 = vadd.f32 %v191_v12, %v188_v11 }
  0xd4   :  { %v194_v16 = vsub.f32 %v193_v13, %v506_v10 }
  0xd6   :  { %vm195_vm6 = vcmp.gt.f32.partialorder %v194_v16, 1.0  ;;  %199 = vst [vmem:[%s965_s3 + $0x6] sm:$0x1] %v194_v16  ;;  %v200_v19 = vmul.f32 0.9, %v194_v16 }
  0xd7   :  { %v507_v18 = vsel %vm195_vm6, 1.0, %v566_v38 }
  0xd8   :  { %198 = vst [vmem:[%s966_s2 + $0x6] sm:$0x1] %v507_v18 }
  0xd9   :  { %v203_v20 = vld [vmem:[#allocation1 + $0x7] ss:$9 sm:$0xff] }
  0xda   :  { %v205_v21 = vadd.f32 %v203_v20, %v200_v19  ;;  %222 = vst [vmem:[#allocation1] sm:$0xff] %v751_v17 }
  0xdc   :  { %v206_v22 = vsub.f32 %v205_v21, %v507_v18 }
  0xde   :  { %vm207_vm7 = vcmp.gt.f32.partialorder %v206_v22, 1.0  ;;  %211 = vst [vmem:[%s965_s3 + $0x7] sm:$0x1] %v206_v22  ;;  %v212_v23 = vmul.f32 0.9, %v206_v22 }
  0xdf   :  { %v508_v24 = vsel %vm207_vm7, 1.0, %v566_v38 }
  0xe0   :  { %210 = vst [vmem:[%s966_s2 + $0x7] sm:$0x1] %v508_v24  ;;  %v213_v25 = vadd.f32 %v212_v23, %v751_v17 }
  0xe1   :  { %v224_v26 = vld [vmem:[#allocation1 + $0x1] ss:$9 sm:$0xff] }
  0xe2   :  { %v214_v27 = vsub.f32 %v213_v25, %v508_v24  ;;  %234 = vst [vmem:[#allocation1] sm:$0xff] %v751_v17 }
  0xe4   :  { %vm215_vm8 = vcmp.gt.f32.partialorder %v214_v27, 1.0  ;;  %219 = vst [vmem:[%s965_s3 + $0x8] sm:$0x1] %v214_v27  ;;  %v220_v28 = vmul.f32 0.9, %v214_v27 }
  0xe5   :  { %v509_v29 = vsel %vm215_vm8, 1.0, %v566_v38 }
  0xe6   :  { %218 = vst [vmem:[%s966_s2 + $0x8] sm:$0x1] %v509_v29  ;;  %v226_v30 = vadd.f32 %v224_v26, %v220_v28 }
  0xe8   :  { %v227_v31 = vsub.f32 %v226_v30, %v509_v29 }
  0xe9   :  { %v236_v32 = vld [vmem:[#allocation1 + $0x2] ss:$9 sm:$0xff] }
  0xea   :  { %vm228_vm9 = vcmp.gt.f32.partialorder %v227_v31, 1.0  ;;  %232 = vst [vmem:[%s965_s3 + $0x9] sm:$0x1] %v227_v31  ;;  %v233_v33 = vmul.f32 0.9, %v227_v31 }
  0xeb   :  { %v510_v34 = vsel %vm228_vm9, 1.0, %v566_v38  ;;  %246 = vst [vmem:[#allocation1] sm:$0xff] %v751_v17 }
  0xec   :  { %231 = vst [vmem:[%s966_s2 + $0x9] sm:$0x1] %v510_v34  ;;  %v238_v35 = vadd.f32 %v236_v32, %v233_v33 }
  0xee   :  { %v239_v36 = vsub.f32 %v238_v35, %v510_v34  ;;  %v85_v35 = vpop.f32.mrf.mxu2 }
  0xf0   :  { %vm240_vm10 = vcmp.gt.f32.partialorder %v239_v36, 1.0  ;;  %244 = vst [vmem:[%s965_s3 + $0xa] sm:$0x1] %v239_v36  ;;  %v245_v37 = vmul.f32 0.9, %v239_v36  ;;  %v114_v36 = vpop.f32.mrf.mxu3 }
  0xf1   :  { %v511_v39 = vsel %vm240_vm10, 1.0, %v566_v38 }
  0xf2   :  { %243 = vst [vmem:[%s966_s2 + $0xa] sm:$0x1] %v511_v39  ;;  %v248_v40 = vld [vmem:[#allocation1 + $0x3] ss:$9 sm:$0xff] }
  0xf3   :  { %v250_v41 = vadd.f32 %v248_v40, %v245_v37  ;;  %258 = vst [vmem:[#allocation1] sm:$0xff] %v751_v17 }
  0xf5   :  { %v251_v42 = vsub.f32 %v250_v41, %v511_v39  ;;  %v883_v39 = vadd.f32 %v114_v36, %v85_v35 }
  0xf7   :  { %vm252_vm11 = vcmp.gt.f32.partialorder %v251_v42, 1.0  ;;  %256 = vst [vmem:[%s965_s3 + $0xb] sm:$0x1] %v251_v42  ;;  %v257_v44 = vmul.f32 0.9, %v251_v42 }
  0xf8   :  { %v512_v43 = vsel %vm252_vm11, 1.0, %v566_v38 }
  0xf9   :  { %255 = vst [vmem:[%s966_s2 + $0xb] sm:$0x1] %v512_v43 }
  0xfa   :  { %v260_v45 = vld [vmem:[#allocation1 + $0x4] ss:$9 sm:$0xff] }
  0xfb   :  { %270 = vst [vmem:[#allocation1] sm:$0xff] %v751_v17  ;;  %v262_v46 = vadd.f32 %v260_v45, %v257_v44 }
  0xfd   :  { %v263_v47 = vsub.f32 %v262_v46, %v512_v43 }
  0xff   :  { %vm264_vm12 = vcmp.gt.f32.partialorder %v263_v47, 1.0  ;;  %268 = vst [vmem:[%s965_s3 + $0xc] sm:$0x1] %v263_v47  ;;  %v269_v49 = vmul.f32 0.9, %v263_v47 }
 0x100   :  { %v513_v48 = vsel %vm264_vm12, 1.0, %v566_v38 }
 0x101   :  { %267 = vst [vmem:[%s966_s2 + $0xc] sm:$0x1] %v513_v48 }
 0x102   :  { %v272_v50 = vld [vmem:[#allocation1 + $0x5] ss:$9 sm:$0xff] }
 0x103   :  { %282 = vst [vmem:[#allocation1] sm:$0xff] %v751_v17  ;;  %v274_v51 = vadd.f32 %v272_v50, %v269_v49 }
 0x105   :  { %v275_v52 = vsub.f32 %v274_v51, %v513_v48 }
 0x107   :  { %vm276_vm13 = vcmp.gt.f32.partialorder %v275_v52, 1.0  ;;  %280 = vst [vmem:[%s965_s3 + $0xd] sm:$0x1] %v275_v52  ;;  %v281_v54 = vmul.f32 0.9, %v275_v52 }
 0x108   :  { %v514_v53 = vsel %vm276_vm13, 1.0, %v566_v38 }
 0x109   :  { %279 = vst [vmem:[%s966_s2 + $0xd] sm:$0x1] %v514_v53 }
 0x10a   :  { %v284_v55 = vld [vmem:[#allocation1 + $0x6] ss:$9 sm:$0xff] }
 0x10b   :  { %v286_v56 = vadd.f32 %v284_v55, %v281_v54  ;;  %294 = vst [vmem:[#allocation1] sm:$0xff] %v751_v17 }
 0x10d   :  { %v287_v59 = vsub.f32 %v286_v56, %v514_v53 }
 0x10f   :  { %vm288_vm14 = vcmp.gt.f32.partialorder %v287_v59, 1.0  ;;  %292 = vst [vmem:[%s965_s3 + $0xe] sm:$0x1] %v287_v59  ;;  %v293_v62 = vmul.f32 0.9, %v287_v59 }
 0x110   :  { %v515_v61 = vsel %vm288_vm14, 1.0, %v566_v38 }
 0x111   :  { %291 = vst [vmem:[%s966_s2 + $0xe] sm:$0x1] %v515_v61 }
 0x112   :  { %v296_v63 = vld [vmem:[#allocation1 + $0x7] ss:$9 sm:$0xff] }
 0x113   :  { %v298_v0 = vadd.f32 %v296_v63, %v293_v62  ;;  %315 = vst [vmem:[#allocation1] sm:$0xff] %v817_v60 }
 0x115   :  { %v299_v1 = vsub.f32 %v298_v0, %v515_v61 }
 0x117   :  { %vm300_vm15 = vcmp.gt.f32.partialorder %v299_v1, 1.0  ;;  %304 = vst [vmem:[%s965_s3 + $0xf] sm:$0x1] %v299_v1  ;;  %v305_v2 = vmul.f32 0.9, %v299_v1 }
 0x118   :  { %v516_v3 = vsel %vm300_vm15, 1.0, %v566_v38 }
 0x119   :  { %303 = vst [vmem:[%s966_s2 + $0xf] sm:$0x1] %v516_v3  ;;  %v306_v4 = vadd.f32 %v305_v2, %v817_v60 }
 0x11a   :  { %v317_v5 = vld [vmem:[#allocation1 + $0x1] ss:$9 sm:$0xff] }
 0x11b   :  { %v307_v6 = vsub.f32 %v306_v4, %v516_v3  ;;  %327 = vst [vmem:[#allocation1] sm:$0xff] %v817_v60 }
 0x11d   :  { %vm308_vm0 = vcmp.gt.f32.partialorder %v307_v6, 1.0  ;;  %312 = vst [vmem:[%s965_s3 + $0x10] sm:$0x1] %v307_v6  ;;  %v313_v7 = vmul.f32 0.9, %v307_v6 }
 0x11e   :  { %v517_v8 = vsel %vm308_vm0, 1.0, %v566_v38 }
 0x11f   :  { %311 = vst [vmem:[%s966_s2 + $0x10] sm:$0x1] %v517_v8  ;;  %v319_v9 = vadd.f32 %v317_v5, %v313_v7 }
 0x121   :  { %v320_v10 = vsub.f32 %v319_v9, %v517_v8 }
 0x122   :  { %v329_v11 = vld [vmem:[#allocation1 + $0x2] ss:$9 sm:$0xff] }
 0x123   :  { %vm321_vm1 = vcmp.gt.f32.partialorder %v320_v10, 1.0  ;;  %325 = vst [vmem:[%s965_s3 + $0x11] sm:$0x1] %v320_v10  ;;  %v326_v12 = vmul.f32 0.9, %v320_v10 }
 0x124   :  { %v518_v13 = vsel %vm321_vm1, 1.0, %v566_v38  ;;  %339 = vst [vmem:[#allocation1] sm:$0xff] %v817_v60 }
 0x125   :  { %324 = vst [vmem:[%s966_s2 + $0x11] sm:$0x1] %v518_v13  ;;  %v331_v14 = vadd.f32 %v329_v11, %v326_v12 }
 0x127   :  { %v332_v15 = vsub.f32 %v331_v14, %v518_v13 }
 0x129   :  { %vm333_vm2 = vcmp.gt.f32.partialorder %v332_v15, 1.0  ;;  %337 = vst [vmem:[%s965_s3 + $0x12] sm:$0x1] %v332_v15  ;;  %v338_v16 = vmul.f32 0.9, %v332_v15 }
 0x12a   :  { %v519_v17 = vsel %vm333_vm2, 1.0, %v566_v38 }
 0x12b   :  { %336 = vst [vmem:[%s966_s2 + $0x12] sm:$0x1] %v519_v17  ;;  %v341_v18 = vld [vmem:[#allocation1 + $0x3] ss:$9 sm:$0xff] }
 0x12c   :  { %v343_v19 = vadd.f32 %v341_v18, %v338_v16  ;;  %351 = vst [vmem:[#allocation1] sm:$0xff] %v817_v60 }
 0x12e   :  { %v344_v20 = vsub.f32 %v343_v19, %v519_v17 }
 0x130   :  { %vm345_vm3 = vcmp.gt.f32.partialorder %v344_v20, 1.0  ;;  %349 = vst [vmem:[%s965_s3 + $0x13] sm:$0x1] %v344_v20  ;;  %v350_v22 = vmul.f32 0.9, %v344_v20 }
 0x131   :  { %v520_v21 = vsel %vm345_vm3, 1.0, %v566_v38 }
 0x132   :  { %348 = vst [vmem:[%s966_s2 + $0x13] sm:$0x1] %v520_v21 }
 0x133   :  { %v353_v23 = vld [vmem:[#allocation1 + $0x4] ss:$9 sm:$0xff] }
 0x134   :  { %v355_v24 = vadd.f32 %v353_v23, %v350_v22  ;;  %363 = vst [vmem:[#allocation1] sm:$0xff] %v817_v60 }
 0x136   :  { %v356_v25 = vsub.f32 %v355_v24, %v520_v21 }
 0x138   :  { %vm357_vm4 = vcmp.gt.f32.partialorder %v356_v25, 1.0  ;;  %361 = vst [vmem:[%s965_s3 + $0x14] sm:$0x1] %v356_v25  ;;  %v362_v27 = vmul.f32 0.9, %v356_v25 }
 0x139   :  { %v521_v26 = vsel %vm357_vm4, 1.0, %v566_v38 }
 0x13a   :  { %360 = vst [vmem:[%s966_s2 + $0x14] sm:$0x1] %v521_v26 }
 0x13b   :  { %v365_v28 = vld [vmem:[#allocation1 + $0x5] ss:$9 sm:$0xff] }
 0x13c   :  { %v367_v29 = vadd.f32 %v365_v28, %v362_v27  ;;  %375 = vst [vmem:[#allocation1] sm:$0xff] %v817_v60 }
 0x13e   :  { %v368_v30 = vsub.f32 %v367_v29, %v521_v26 }
 0x140   :  { %vm369_vm5 = vcmp.gt.f32.partialorder %v368_v30, 1.0  ;;  %373 = vst [vmem:[%s965_s3 + $0x15] sm:$0x1] %v368_v30  ;;  %v374_v32 = vmul.f32 0.9, %v368_v30 }
 0x141   :  { %v522_v31 = vsel %vm369_vm5, 1.0, %v566_v38 }
 0x142   :  { %372 = vst [vmem:[%s966_s2 + $0x15] sm:$0x1] %v522_v31 }
 0x143   :  { %v377_v33 = vld [vmem:[#allocation1 + $0x6] ss:$9 sm:$0xff] }
 0x144   :  { %v379_v34 = vadd.f32 %v377_v33, %v374_v32  ;;  %387 = vst [vmem:[#allocation1] sm:$0xff] %v817_v60 }
 0x146   :  { %v380_v37 = vsub.f32 %v379_v34, %v522_v31 }
 0x148   :  { %vm381_vm6 = vcmp.gt.f32.partialorder %v380_v37, 1.0  ;;  %385 = vst [vmem:[%s965_s3 + $0x16] sm:$0x1] %v380_v37  ;;  %v386_v41 = vmul.f32 0.9, %v380_v37 }
 0x149   :  { %v523_v40 = vsel %vm381_vm6, 1.0, %v566_v38 }
 0x14a   :  { %384 = vst [vmem:[%s966_s2 + $0x16] sm:$0x1] %v523_v40 }
 0x14b   :  { %v389_v42 = vld [vmem:[#allocation1 + $0x7] ss:$9 sm:$0xff] }
 0x14c   :  { %v391_v43 = vadd.f32 %v389_v42, %v386_v41  ;;  %408 = vst [vmem:[#allocation1] sm:$0xff] %v883_v39 }
 0x14e   :  { %v392_v44 = vsub.f32 %v391_v43, %v523_v40 }
 0x150   :  { %vm393_vm7 = vcmp.gt.f32.partialorder %v392_v44, 1.0  ;;  %397 = vst [vmem:[%s965_s3 + $0x17] sm:$0x1] %v392_v44  ;;  %v398_v45 = vmul.f32 0.9, %v392_v44 }
 0x151   :  { %v524_v46 = vsel %vm393_vm7, 1.0, %v566_v38 }
 0x152   :  { %396 = vst [vmem:[%s966_s2 + $0x17] sm:$0x1] %v524_v46  ;;  %v399_v47 = vadd.f32 %v398_v45, %v883_v39 }
 0x153   :  { %v410_v48 = vld [vmem:[#allocation1 + $0x1] ss:$9 sm:$0xff] }
 0x154   :  { %v400_v49 = vsub.f32 %v399_v47, %v524_v46  ;;  %420 = vst [vmem:[#allocation1] sm:$0xff] %v883_v39 }
 0x156   :  { %vm401_vm8 = vcmp.gt.f32.partialorder %v400_v49, 1.0  ;;  %405 = vst [vmem:[%s965_s3 + $0x18] sm:$0x1] %v400_v49  ;;  %v406_v50 = vmul.f32 0.9, %v400_v49 }
 0x157   :  { %v525_v51 = vsel %vm401_vm8, 1.0, %v566_v38 }
 0x158   :  { %404 = vst [vmem:[%s966_s2 + $0x18] sm:$0x1] %v525_v51  ;;  %v412_v52 = vadd.f32 %v410_v48, %v406_v50 }
 0x15a   :  { %v413_v53 = vsub.f32 %v412_v52, %v525_v51 }
 0x15b   :  { %v422_v54 = vld [vmem:[#allocation1 + $0x2] ss:$9 sm:$0xff] }
 0x15c   :  { %vm414_vm9 = vcmp.gt.f32.partialorder %v413_v53, 1.0  ;;  %418 = vst [vmem:[%s965_s3 + $0x19] sm:$0x1] %v413_v53  ;;  %v419_v55 = vmul.f32 0.9, %v413_v53 }
 0x15d   :  { %v526_v56 = vsel %vm414_vm9, 1.0, %v566_v38  ;;  %432 = vst [vmem:[#allocation1] sm:$0xff] %v883_v39 }
 0x15e   :  { %417 = vst [vmem:[%s966_s2 + $0x19] sm:$0x1] %v526_v56  ;;  %v424_v57 = vadd.f32 %v422_v54, %v419_v55 }
 0x160   :  { %v425_v58 = vsub.f32 %v424_v57, %v526_v56 }
 0x162   :  { %vm426_vm10 = vcmp.gt.f32.partialorder %v425_v58, 1.0  ;;  %430 = vst [vmem:[%s965_s3 + $0x1a] sm:$0x1] %v425_v58  ;;  %v431_v59 = vmul.f32 0.9, %v425_v58 }
 0x163   :  { %v527_v60 = vsel %vm426_vm10, 1.0, %v566_v38 }
 0x164   :  { %429 = vst [vmem:[%s966_s2 + $0x1a] sm:$0x1] %v527_v60  ;;  %v434_v61 = vld [vmem:[#allocation1 + $0x3] ss:$9 sm:$0xff] }
 0x165   :  { %v436_v62 = vadd.f32 %v434_v61, %v431_v59  ;;  %444 = vst [vmem:[#allocation1] sm:$0xff] %v883_v39 }
 0x167   :  { %v437_v63 = vsub.f32 %v436_v62, %v527_v60 }
 0x169   :  { %vm438_vm11 = vcmp.gt.f32.partialorder %v437_v63, 1.0  ;;  %442 = vst [vmem:[%s965_s3 + $0x1b] sm:$0x1] %v437_v63  ;;  %v443_v1 = vmul.f32 0.9, %v437_v63 }
 0x16a   :  { %v528_v0 = vsel %vm438_vm11, 1.0, %v566_v38 }
 0x16b   :  { %441 = vst [vmem:[%s966_s2 + $0x1b] sm:$0x1] %v528_v0 }
 0x16c   :  { %v446_v2 = vld [vmem:[#allocation1 + $0x4] ss:$9 sm:$0xff] }
 0x16d   :  { %v448_v3 = vadd.f32 %v446_v2, %v443_v1  ;;  %456 = vst [vmem:[#allocation1] sm:$0xff] %v883_v39 }
 0x16f   :  { %v449_v4 = vsub.f32 %v448_v3, %v528_v0 }
 0x171   :  { %vm450_vm12 = vcmp.gt.f32.partialorder %v449_v4, 1.0  ;;  %454 = vst [vmem:[%s965_s3 + $0x1c] sm:$0x1] %v449_v4  ;;  %v455_v6 = vmul.f32 0.9, %v449_v4 }
 0x172   :  { %v529_v5 = vsel %vm450_vm12, 1.0, %v566_v38 }
 0x173   :  { %453 = vst [vmem:[%s966_s2 + $0x1c] sm:$0x1] %v529_v5 }
 0x174   :  { %v458_v7 = vld [vmem:[#allocation1 + $0x5] ss:$9 sm:$0xff] }
 0x175   :  { %v460_v8 = vadd.f32 %v458_v7, %v455_v6  ;;  %468 = vst [vmem:[#allocation1] sm:$0xff] %v883_v39 }
 0x177   :  { %v461_v9 = vsub.f32 %v460_v8, %v529_v5 }
 0x179   :  { %vm462_vm13 = vcmp.gt.f32.partialorder %v461_v9, 1.0  ;;  %466 = vst [vmem:[%s965_s3 + $0x1d] sm:$0x1] %v461_v9  ;;  %v467_v11 = vmul.f32 0.9, %v461_v9 }
 0x17a   :  { %v530_v10 = vsel %vm462_vm13, 1.0, %v566_v38 }
 0x17b   :  { %465 = vst [vmem:[%s966_s2 + $0x1d] sm:$0x1] %v530_v10 }
 0x17c   :  { %v470_v12 = vld [vmem:[#allocation1 + $0x6] ss:$9 sm:$0xff] }
 0x17d   :  { %v472_v13 = vadd.f32 %v470_v12, %v467_v11  ;;  %480 = vst [vmem:[#allocation1] sm:$0xff] %v883_v39 }
 0x17f   :  { %v473_v14 = vsub.f32 %v472_v13, %v530_v10 }
 0x181   :  { %vm474_vm14 = vcmp.gt.f32.partialorder %v473_v14, 1.0  ;;  %478 = vst [vmem:[%s965_s3 + $0x1e] sm:$0x1] %v473_v14  ;;  %v479_v16 = vmul.f32 0.9, %v473_v14 }
 0x182   :  { %v531_v15 = vsel %vm474_vm14, 1.0, %v566_v38 }
 0x183   :  { %477 = vst [vmem:[%s966_s2 + $0x1e] sm:$0x1] %v531_v15 }
 0x184   :  { %v482_v17 = vld [vmem:[#allocation1 + $0x7] ss:$9 sm:$0xff] }
 0x185   :  { %v484_v18 = vadd.f32 %v482_v17, %v479_v16 }
 0x187   :  { %v485_v19 = vsub.f32 %v484_v18, %v531_v15 }
 0x189   :  { %vm486_vm15 = vcmp.gt.f32.partialorder %v485_v19, 1.0  ;;  %490 = vst [vmem:[%s965_s3 + $0x1f] sm:$0x1] %v485_v19 }
 0x18a   :  { %v532_v20 = vsel %vm486_vm15, 1.0, %v566_v38  ;;  %491 = vst [vmem:[#allocation2] sm:$0x1] %v485_v19 }
 0x18b   :  { %489 = vst [vmem:[%s966_s2 + $0x1f] sm:$0x1] %v532_v20 }
 0x18c   :  { %492 = vst [vmem:[#allocation3] sm:$0x1] %v532_v20 }

</bundles_post_ra>
